<compile_context>
chip_gen: v6e
topology: v6e:2x2x1
jax: 0.10.0
libtpu: 0.0.40
codegen_flags: <defaults>
</compile_context>

<pallas_src>
import jax
import jax.numpy as jnp
from jax.experimental import pallas as pl
from jax.experimental.pallas import tpu as pltpu

WINDOW_SIZE = 11
HALF = WINDOW_SIZE // 2          # 5
SIGMA = 1.5
C1 = 0.01 ** 2
C2 = 0.03 ** 2


def _cdiv(a, b):
    return -(-a // b)


def _round_up(a, m):
    return _cdiv(a, m) * m


def _largest_divisor_leq(n, cap):
    cap = max(1, min(n, cap))
    for d in range(cap, 0, -1):
        if n % d == 0:
            return d
    return 1


def _gaussian_1d(window_size, sigma):
    xs = jnp.arange(window_size, dtype=jnp.float32)
    center = window_size // 2
    g = jnp.exp(-((xs - center) ** 2) / (2.0 * sigma ** 2))
    return g / jnp.sum(g)


def _toeplitz_slab(tile, g):
    """(tile, tile + 10) banded matrix A with A[i, i + k] = g[k].

    `A @ slab` applies the zero-padded "same" 1-D Gaussian filter along the
    leading axis of a halo-padded slab (halo = HALF rows on each side).
    """
    i = jnp.arange(tile)[:, None]
    m = jnp.arange(tile + WINDOW_SIZE - 1)[None, :]
    d = m - i
    valid = (d >= 0) & (d < WINDOW_SIZE)
    return jnp.where(valid, g[jnp.clip(d, 0, WINDOW_SIZE - 1)], 0.0).astype(
        jnp.float32)


def _device_caps():
    """Generation-aware MXU width and VMEM budgets (safe fallbacks)."""
    kind = ""
    try:
        kind = jax.devices()[0].device_kind.lower()
    except Exception:
        pass
    mxu = 128 if any(t in kind for t in ("v2", "v3", "v4", "v5")) else 256
    vmem_phys = (64 << 20) if "v7" in kind else (128 << 20)
    try:
        vmem_phys = int(pltpu.get_tpu_info().vmem_capacity_bytes)
    except Exception:
        pass
    budget = min(int(vmem_phys * 0.55), 80 << 20)   # tiling budget
    cap = min(int(vmem_phys * 0.85), 112 << 20)     # vmem_limit ceiling
    return {"mxu": mxu, "budget": budget, "cap": cap}


def _hint_multiple(x, m):
    if isinstance(x, int):
        return x                       # already static
    return pl.multiple_of(x, m)


def _loop(n, body):
    """fori_loop that degenerates to a fully static call when n == 1."""
    if n <= 1:
        body(0, 0)
    else:
        jax.lax.fori_loop(0, n, body, 0)


def _make_ssim_kernel(TB, NB, TH, TW, n_rb, n_cb, H, W):
    THh = TH + 2 * HALF
    TWh = TW + 2 * HALF
    THh_pad = _round_up(THh, 8)
    n_groups = TB // NB
    need_mask = (n_rb * TH != H) or (n_cb * TW != W)
    row_hint = 8 if TH % 8 == 0 else 1
    col_hint = 128 if TW % 128 == 0 else 1

    def kernel(x_ref, y_ref, ah_ref, awt_ref, o_ref, s_ref, f_ref, acc_ref):
        # Zero once per grid step: keeps the sublane-pad rows of every slab
        # slot at zero (they are never overwritten) and resets the accumulator.
        s_ref[...] = jnp.zeros(s_ref.shape, s_ref.dtype)
        acc_ref[...] = jnp.zeros(acc_ref.shape, acc_ref.dtype)

        def tile_body(t, carry):
            rb = t // n_cb
            cb = t % n_cb
            r0 = _hint_multiple(rb * TH, row_hint)
            c0 = _hint_multiple(cb * TW, col_hint)

            if need_mask:
                rows_valid = jnp.minimum(TH, H - rb * TH)
                cols_valid = jnp.minimum(TW, W - cb * TW)
                ri = jax.lax.broadcasted_iota(jnp.int32, (TH, TW), 0)
                ci = jax.lax.broadcasted_iota(jnp.int32, (TH, TW), 1)
                mask = (ri < rows_valid) & (ci < cols_valid)

            def group_body(gi, carry2):
                # ---- stack 5*NB halo slabs along sublanes into 8-aligned
                # ---- slots (lane width fixed at TWh -> no lane relayouts) --
                for j in range(NB):
                    b = gi * NB + j
                    xs = x_ref[b, pl.ds(r0, THh), pl.ds(c0, TWh)]
                    ys = y_ref[b, pl.ds(r0, THh), pl.ds(c0, TWh)]
                    base = 5 * j * THh_pad
                    s_ref[pl.ds(base + 0 * THh_pad, THh), :] = xs
                    s_ref[pl.ds(base + 1 * THh_pad, THh), :] = ys
                    s_ref[pl.ds(base + 2 * THh_pad, THh), :] = xs * xs
                    s_ref[pl.ds(base + 3 * THh_pad, THh), :] = ys * ys
                    s_ref[pl.ds(base + 4 * THh_pad, THh), :] = xs * ys

                # ---- column (lane) filter: one batched MXU matmul ----------
                f_ref[...] = jnp.dot(s_ref[...], awt_ref[...],
                                     preferred_element_type=jnp.float32)

                # ---- row (sublane) filter + SSIM map, per slice ------------
                for j in range(NB):
                    base = 5 * j * THh_pad

                    def rowf(p, base=base):
                        return jnp.dot(
                            ah_ref[...],
                            f_ref[pl.ds(base + p * THh_pad, THh_pad), :],
                            preferred_element_type=jnp.float32)

                    mu1, mu2 = rowf(0), rowf(1)
                    fxx, fyy, fxy = rowf(2), rowf(3), rowf(4)

                    mu1_sq = mu1 * mu1
                    mu2_sq = mu2 * mu2
                    mu1_mu2 = mu1 * mu2
                    sigma1_sq = fxx - mu1_sq
                    sigma2_sq = fyy - mu2_sq
                    sigma12 = fxy - mu1_mu2

                    num = (2.0 * mu1_mu2 + C1) * (2.0 * sigma12 + C2)
                    den = (mu1_sq + mu2_sq + C1) * (sigma1_sq + sigma2_sq + C2)
                    inv = pl.reciprocal(den, approx=True)     # EUP slot
                    inv = inv * (2.0 - den * inv)             # Newton -> ~f32
                    ssim = num * inv
                    if need_mask:
                        ssim = jnp.where(mask, ssim, 0.0)
                    acc_ref[...] += ssim
                return carry2

            _loop(n_groups, group_body)
            return carry

        _loop(n_rb * n_cb, tile_body)

        # one cross-lane reduction per grid step; each step owns its block.
        o_ref[...] = jnp.zeros((1, 1, 128), jnp.float32) + jnp.sum(acc_ref[...])

    return kernel


def ssim_loss(x, y):
    """1 - SSIM(x, y) for NCHW inputs (matches the PyTorch SSIMLoss module)."""
    N, C, H, W = x.shape
    B = N * C
    caps = _device_caps()

    # ---- tile sizes aligned to the MXU K granularity ------------------------
    th_t = 240 if caps["mxu"] >= 256 else 112    # TH + 10 fits one K pass
    tw_t = 256 if caps["mxu"] >= 256 else 128
    if H <= th_t:
        n_rb, TH = 1, H
    else:
        n_rb = _cdiv(H, th_t)
        TH = _round_up(_cdiv(H, n_rb), 8)
    if W <= tw_t:
        n_cb, TW = 1, W
    else:
        n_cb = _cdiv(W, tw_t)
        TW = _round_up(_cdiv(W, n_cb), 128)      # lane-dense outputs

    THh = TH + 2 * HALF
    TWh = TW + 2 * HALF
    THh_pad = _round_up(THh, 8)
    HpT = n_rb * TH + 2 * HALF
    WpT = n_cb * TW + 2 * HALF

    # ---- inner matmul batch NB (bounds live intermediates, ~4 MiB) ----------
    per_slice = 5 * THh_pad * (TWh + TW) * 4
    nb_cap = max(1, (4 << 20) // per_slice)

    # ---- slices per grid step TB (bounds resident double-buffered inputs) ---
    per_tb = 4 * HpT * WpT * 4                   # x + y, double-buffered, f32
    tb_cap = max(1, (caps["budget"] - (12 << 20)) // per_tb)
    tb_limit = min(16, tb_cap)
    if B >= 2:                                   # keep grid >= 2 for v7x megacore
        tb_limit = min(tb_limit, max(1, B // 2))
    TB = _largest_divisor_leq(B, max(1, tb_limit))
    G = B // TB
    NB = _largest_divisor_leq(TB, min(8, nb_cap))

    # ---- zero padding (halo + tile alignment), == conv2d padding=5 ----------
    # TODO(synk): fold the zero padding into the kernel (boundary-clipped
    # Toeplitz slabs / zero-initialized halo scratch) to drop the extra HBM
    # round trip of the padded copies.
    xr = x.reshape(B, H, W).astype(jnp.float32)
    yr = y.reshape(B, H, W).astype(jnp.float32)
    pad_h = (HALF, HpT - H - HALF)
    pad_w = (HALF, WpT - W - HALF)
    x_pad = jnp.pad(xr, ((0, 0), pad_h, pad_w))
    y_pad = jnp.pad(yr, ((0, 0), pad_h, pad_w))

    # ---- banded (Toeplitz) separable-filter slabs ----------------------------
    g = _gaussian_1d(WINDOW_SIZE, SIGMA)
    ah = jnp.zeros((TH, THh_pad), jnp.float32).at[:, :THh].set(
        _toeplitz_slab(TH, g))                   # (TH, THh_pad), zero pad cols
    awt = _toeplitz_slab(TW, g).T                # (TWh, TW)

    # ---- VMEM accounting (never clamp the limit below the estimate) ---------
    est = (4 * TB * HpT * WpT * 4                        # x, y (double-buffered)
           + 2 * (TH * THh_pad + TWh * TW) * 4           # filter slabs
           + 5 * NB * THh_pad * (TWh + TW) * 4           # stack + filtered scratch
           + 12 * TH * TW * 4)                           # acc + SSIM temporaries
    vmem_limit = int(min(caps["cap"], max(int(est * 1.3) + (2 << 20), 32 << 20)))
    # TODO(synk): for images whose single padded slice exceeds the VMEM cap,
    # move the row tile onto the grid with manual halo DMA (pl.ANY refs).

    kernel = _make_ssim_kernel(TB, NB, TH, TW, n_rb, n_cb, H, W)

    partials = pl.pallas_call(
        kernel,
        out_shape=jax.ShapeDtypeStruct((G, 1, 128), jnp.float32),
        grid_spec=pltpu.PrefetchScalarGridSpec(
            num_scalar_prefetch=0,
            grid=(G,),
            in_specs=[
                pl.BlockSpec((TB, HpT, WpT), lambda i: (i, 0, 0)),
                pl.BlockSpec((TB, HpT, WpT), lambda i: (i, 0, 0)),
                pl.BlockSpec((TH, THh_pad), lambda i: (0, 0)),
                pl.BlockSpec((TWh, TW), lambda i: (0, 0)),
            ],
            out_specs=pl.BlockSpec((1, 1, 128), lambda i: (i, 0, 0)),
            scratch_shapes=[
                pltpu.VMEM((5 * NB * THh_pad, TWh), jnp.float32),  # slab stack
                pltpu.VMEM((5 * NB * THh_pad, TW), jnp.float32),   # col-filtered
                pltpu.VMEM((TH, TW), jnp.float32),                 # ssim accum
            ],
        ),
        compiler_params=pltpu.CompilerParams(
            dimension_semantics=("parallel",),
            vmem_limit_bytes=vmem_limit,
        ),
    )(x_pad, y_pad, ah, awt)

    mean_ssim = jnp.sum(partials[:, 0, 0]) / jnp.float32(B * H * W)
    return 1.0 - mean_ssim


def _ssim_loss_reference(x, y):
    """Pure-JAX (lax.conv) reference replicating the PyTorch module."""
    N, C, H, W = x.shape
    g = _gaussian_1d(WINDOW_SIZE, SIGMA)
    w2d = jnp.outer(g, g).astype(jnp.float32)
    kern = jnp.broadcast_to(w2d, (C, 1, WINDOW_SIZE, WINDOW_SIZE))

    def filt(t):
        return jax.lax.conv_general_dilated(
            t.astype(jnp.float32), kern, window_strides=(1, 1),
            padding=[(HALF, HALF), (HALF, HALF)],
            dimension_numbers=("NCHW", "OIHW", "NCHW"),
            feature_group_count=C,
            precision=jax.lax.Precision.HIGHEST)

    mu1, mu2 = filt(x), filt(y)
    mu1_sq, mu2_sq, mu1_mu2 = mu1 * mu1, mu2 * mu2, mu1 * mu2
    s1 = filt(x * x) - mu1_sq
    s2 = filt(y * y) - mu2_sq
    s12 = filt(x * y) - mu1_mu2
    ssim_map = ((2.0 * mu1_mu2 + C1) * (2.0 * s12 + C2)) / (
        (mu1_sq + mu2_sq + C1) * (s1 + s2 + C2))
    return 1.0 - jnp.mean(ssim_map)


if __name__ == "__main__":
    key = jax.random.PRNGKey(0)
    kx, ky = jax.random.split(key)
    x = jax.random.uniform(kx, (2, 4, 16, 16), dtype=jnp.float32)
    y = jax.random.uniform(ky, (2, 4, 16, 16), dtype=jnp.float32)

    loss = ssim_loss(x, y)
    jax.block_until_ready(loss)

    ref = _ssim_loss_reference(x, y)
    assert abs(float(loss) - float(ref)) < 2e-3, (float(loss), float(ref))
    print("KERNEL_OK")
</pallas_src>

<mosaic_0001>
module attributes {stable_mosaic.version = 11 : i64} {
  func.func @kernel(%arg0: i32, %arg1: memref<4x26x26xf32, #tpu.memory_space<vmem>>, %arg2: memref<4x26x26xf32, #tpu.memory_space<vmem>>, %arg3: memref<16x32xf32, #tpu.memory_space<vmem>>, %arg4: memref<26x16xf32, #tpu.memory_space<vmem>>, %arg5: memref<1x1x128xf32, #tpu.memory_space<vmem>>, %arg6: memref<640x26xf32, #tpu.memory_space<vmem>>, %arg7: memref<640x16xf32, #tpu.memory_space<vmem>>, %arg8: memref<16x16xf32, #tpu.memory_space<vmem>>) attributes {dimension_semantics = [#tpu.dimension_semantics<parallel>], iteration_bounds = array<i64: 2>, scalar_prefetch = 0 : i64, scratch_operands = 3 : i64, tpu.core_type = #tpu.core_type<tc>, window_params = [{transform_indices = @transform_0, window_bounds = array<i64: 4, 26, 26>}, {transform_indices = @transform_1, window_bounds = array<i64: 4, 26, 26>}, {pipeline_mode = #tpu.pipeline_mode<synchronous>, transform_indices = @transform_2, window_bounds = array<i64: 16, 32>}, {pipeline_mode = #tpu.pipeline_mode<synchronous>, transform_indices = @transform_3, window_bounds = array<i64: 26, 16>}, {transform_indices = @transform_4, window_bounds = array<i64: 1, 1, 128>}]} {
    %cst = arith.constant 0.000000e+00 : f32
    %0 = vector.broadcast %cst : f32 to vector<640x26xf32>
    %c0 = arith.constant 0 : index
    %c0_0 = arith.constant 0 : index
    %1 = vector.load %arg6[%c0, %c0_0] : memref<640x26xf32, #tpu.memory_space<vmem>>, vector<640x26xf32>
    tpu.vector_store %arg6[%c0, %c0_0], %0 {strides = array<i32>} : memref<640x26xf32, #tpu.memory_space<vmem>>, vector<640x26xf32>,
    %cst_1 = arith.constant 0.000000e+00 : f32
    %2 = vector.broadcast %cst_1 : f32 to vector<16x16xf32>
    %c0_2 = arith.constant 0 : index
    %c0_3 = arith.constant 0 : index
    %3 = vector.load %arg8[%c0_2, %c0_3] : memref<16x16xf32, #tpu.memory_space<vmem>>, vector<16x16xf32>
    tpu.vector_store %arg8[%c0_2, %c0_3], %2 {strides = array<i32>} : memref<16x16xf32, #tpu.memory_space<vmem>>, vector<16x16xf32>,
    %c0_4 = arith.constant 0 : index
    %c0_5 = arith.constant 0 : index
    %c0_6 = arith.constant 0 : index
    %4 = vector.load %arg1[%c0_4, %c0_5, %c0_6] : memref<4x26x26xf32, #tpu.memory_space<vmem>>, vector<1x26x26xf32>
    %5 = vector.shape_cast %4 : vector<1x26x26xf32> to vector<26x26xf32>
    %c0_7 = arith.constant 0 : index
    %c0_8 = arith.constant 0 : index
    %c0_9 = arith.constant 0 : index
    %6 = vector.load %arg2[%c0_7, %c0_8, %c0_9] : memref<4x26x26xf32, #tpu.memory_space<vmem>>, vector<1x26x26xf32>
    %7 = vector.shape_cast %6 : vector<1x26x26xf32> to vector<26x26xf32>
    %c0_10 = arith.constant 0 : index
    %c0_11 = arith.constant 0 : index
    %8 = vector.load %arg6[%c0_10, %c0_11] : memref<640x26xf32, #tpu.memory_space<vmem>>, vector<26x26xf32>
    tpu.vector_store %arg6[%c0_10, %c0_11], %5 {strides = array<i32>} : memref<640x26xf32, #tpu.memory_space<vmem>>, vector<26x26xf32>,
    %c32 = arith.constant 32 : index
    %c0_12 = arith.constant 0 : index
    %9 = vector.load %arg6[%c32, %c0_12] : memref<640x26xf32, #tpu.memory_space<vmem>>, vector<26x26xf32>
    tpu.vector_store %arg6[%c32, %c0_12], %7 {strides = array<i32>} : memref<640x26xf32, #tpu.memory_space<vmem>>, vector<26x26xf32>,
    %10 = arith.mulf %5, %5 : vector<26x26xf32>
    %c64 = arith.constant 64 : index
    %c0_13 = arith.constant 0 : index
    %11 = vector.load %arg6[%c64, %c0_13] : memref<640x26xf32, #tpu.memory_space<vmem>>, vector<26x26xf32>
    tpu.vector_store %arg6[%c64, %c0_13], %10 {strides = array<i32>} : memref<640x26xf32, #tpu.memory_space<vmem>>, vector<26x26xf32>,
    %12 = arith.mulf %7, %7 : vector<26x26xf32>
    %c96 = arith.constant 96 : index
    %c0_14 = arith.constant 0 : index
    %13 = vector.load %arg6[%c96, %c0_14] : memref<640x26xf32, #tpu.memory_space<vmem>>, vector<26x26xf32>
    tpu.vector_store %arg6[%c96, %c0_14], %12 {strides = array<i32>} : memref<640x26xf32, #tpu.memory_space<vmem>>, vector<26x26xf32>,
    %14 = arith.mulf %5, %7 : vector<26x26xf32>
    %c128 = arith.constant 128 : index
    %c0_15 = arith.constant 0 : index
    %15 = vector.load %arg6[%c128, %c0_15] : memref<640x26xf32, #tpu.memory_space<vmem>>, vector<26x26xf32>
    tpu.vector_store %arg6[%c128, %c0_15], %14 {strides = array<i32>} : memref<640x26xf32, #tpu.memory_space<vmem>>, vector<26x26xf32>,
    %c1 = arith.constant 1 : index
    %c0_16 = arith.constant 0 : index
    %c0_17 = arith.constant 0 : index
    %16 = vector.load %arg1[%c1, %c0_16, %c0_17] : memref<4x26x26xf32, #tpu.memory_space<vmem>>, vector<1x26x26xf32>
    %17 = vector.shape_cast %16 : vector<1x26x26xf32> to vector<26x26xf32>
    %c1_18 = arith.constant 1 : index
    %c0_19 = arith.constant 0 : index
    %c0_20 = arith.constant 0 : index
    %18 = vector.load %arg2[%c1_18, %c0_19, %c0_20] : memref<4x26x26xf32, #tpu.memory_space<vmem>>, vector<1x26x26xf32>
    %19 = vector.shape_cast %18 : vector<1x26x26xf32> to vector<26x26xf32>
    %c160 = arith.constant 160 : index
    %c0_21 = arith.constant 0 : index
    %20 = vector.load %arg6[%c160, %c0_21] : memref<640x26xf32, #tpu.memory_space<vmem>>, vector<26x26xf32>
    tpu.vector_store %arg6[%c160, %c0_21], %17 {strides = array<i32>} : memref<640x26xf32, #tpu.memory_space<vmem>>, vector<26x26xf32>,
    %c192 = arith.constant 192 : index
    %c0_22 = arith.constant 0 : index
    %21 = vector.load %arg6[%c192, %c0_22] : memref<640x26xf32, #tpu.memory_space<vmem>>, vector<26x26xf32>
    tpu.vector_store %arg6[%c192, %c0_22], %19 {strides = array<i32>} : memref<640x26xf32, #tpu.memory_space<vmem>>, vector<26x26xf32>,
    %22 = arith.mulf %17, %17 : vector<26x26xf32>
    %c224 = arith.constant 224 : index
    %c0_23 = arith.constant 0 : index
    %23 = vector.load %arg6[%c224, %c0_23] : memref<640x26xf32, #tpu.memory_space<vmem>>, vector<26x26xf32>
    tpu.vector_store %arg6[%c224, %c0_23], %22 {strides = array<i32>} : memref<640x26xf32, #tpu.memory_space<vmem>>, vector<26x26xf32>,
    %24 = arith.mulf %19, %19 : vector<26x26xf32>
    %c256 = arith.constant 256 : index
    %c0_24 = arith.constant 0 : index
    %25 = vector.load %arg6[%c256, %c0_24] : memref<640x26xf32, #tpu.memory_space<vmem>>, vector<26x26xf32>
    tpu.vector_store %arg6[%c256, %c0_24], %24 {strides = array<i32>} : memref<640x26xf32, #tpu.memory_space<vmem>>, vector<26x26xf32>,
    %26 = arith.mulf %17, %19 : vector<26x26xf32>
    %c288 = arith.constant 288 : index
    %c0_25 = arith.constant 0 : index
    %27 = vector.load %arg6[%c288, %c0_25] : memref<640x26xf32, #tpu.memory_space<vmem>>, vector<26x26xf32>
    tpu.vector_store %arg6[%c288, %c0_25], %26 {strides = array<i32>} : memref<640x26xf32, #tpu.memory_space<vmem>>, vector<26x26xf32>,
    %c2 = arith.constant 2 : index
    %c0_26 = arith.constant 0 : index
    %c0_27 = arith.constant 0 : index
    %28 = vector.load %arg1[%c2, %c0_26, %c0_27] : memref<4x26x26xf32, #tpu.memory_space<vmem>>, vector<1x26x26xf32>
    %29 = vector.shape_cast %28 : vector<1x26x26xf32> to vector<26x26xf32>
    %c2_28 = arith.constant 2 : index
    %c0_29 = arith.constant 0 : index
    %c0_30 = arith.constant 0 : index
    %30 = vector.load %arg2[%c2_28, %c0_29, %c0_30] : memref<4x26x26xf32, #tpu.memory_space<vmem>>, vector<1x26x26xf32>
    %31 = vector.shape_cast %30 : vector<1x26x26xf32> to vector<26x26xf32>
    %c320 = arith.constant 320 : index
    %c0_31 = arith.constant 0 : index
    %32 = vector.load %arg6[%c320, %c0_31] : memref<640x26xf32, #tpu.memory_space<vmem>>, vector<26x26xf32>
    tpu.vector_store %arg6[%c320, %c0_31], %29 {strides = array<i32>} : memref<640x26xf32, #tpu.memory_space<vmem>>, vector<26x26xf32>,
    %c352 = arith.constant 352 : index
    %c0_32 = arith.constant 0 : index
    %33 = vector.load %arg6[%c352, %c0_32] : memref<640x26xf32, #tpu.memory_space<vmem>>, vector<26x26xf32>
    tpu.vector_store %arg6[%c352, %c0_32], %31 {strides = array<i32>} : memref<640x26xf32, #tpu.memory_space<vmem>>, vector<26x26xf32>,
    %34 = arith.mulf %29, %29 : vector<26x26xf32>
    %c384 = arith.constant 384 : index
    %c0_33 = arith.constant 0 : index
    %35 = vector.load %arg6[%c384, %c0_33] : memref<640x26xf32, #tpu.memory_space<vmem>>, vector<26x26xf32>
    tpu.vector_store %arg6[%c384, %c0_33], %34 {strides = array<i32>} : memref<640x26xf32, #tpu.memory_space<vmem>>, vector<26x26xf32>,
    %36 = arith.mulf %31, %31 : vector<26x26xf32>
    %c416 = arith.constant 416 : index
    %c0_34 = arith.constant 0 : index
    %37 = vector.load %arg6[%c416, %c0_34] : memref<640x26xf32, #tpu.memory_space<vmem>>, vector<26x26xf32>
    tpu.vector_store %arg6[%c416, %c0_34], %36 {strides = array<i32>} : memref<640x26xf32, #tpu.memory_space<vmem>>, vector<26x26xf32>,
    %38 = arith.mulf %29, %31 : vector<26x26xf32>
    %c448 = arith.constant 448 : index
    %c0_35 = arith.constant 0 : index
    %39 = vector.load %arg6[%c448, %c0_35] : memref<640x26xf32, #tpu.memory_space<vmem>>, vector<26x26xf32>
    tpu.vector_store %arg6[%c448, %c0_35], %38 {strides = array<i32>} : memref<640x26xf32, #tpu.memory_space<vmem>>, vector<26x26xf32>,
    %c3 = arith.constant 3 : index
    %c0_36 = arith.constant 0 : index
    %c0_37 = arith.constant 0 : index
    %40 = vector.load %arg1[%c3, %c0_36, %c0_37] : memref<4x26x26xf32, #tpu.memory_space<vmem>>, vector<1x26x26xf32>
    %41 = vector.shape_cast %40 : vector<1x26x26xf32> to vector<26x26xf32>
    %c3_38 = arith.constant 3 : index
    %c0_39 = arith.constant 0 : index
    %c0_40 = arith.constant 0 : index
    %42 = vector.load %arg2[%c3_38, %c0_39, %c0_40] : memref<4x26x26xf32, #tpu.memory_space<vmem>>, vector<1x26x26xf32>
    %43 = vector.shape_cast %42 : vector<1x26x26xf32> to vector<26x26xf32>
    %c480 = arith.constant 480 : index
    %c0_41 = arith.constant 0 : index
    %44 = vector.load %arg6[%c480, %c0_41] : memref<640x26xf32, #tpu.memory_space<vmem>>, vector<26x26xf32>
    tpu.vector_store %arg6[%c480, %c0_41], %41 {strides = array<i32>} : memref<640x26xf32, #tpu.memory_space<vmem>>, vector<26x26xf32>,
    %c512 = arith.constant 512 : index
    %c0_42 = arith.constant 0 : index
    %45 = vector.load %arg6[%c512, %c0_42] : memref<640x26xf32, #tpu.memory_space<vmem>>, vector<26x26xf32>
    tpu.vector_store %arg6[%c512, %c0_42], %43 {strides = array<i32>} : memref<640x26xf32, #tpu.memory_space<vmem>>, vector<26x26xf32>,
    %46 = arith.mulf %41, %41 : vector<26x26xf32>
    %c544 = arith.constant 544 : index
    %c0_43 = arith.constant 0 : index
    %47 = vector.load %arg6[%c544, %c0_43] : memref<640x26xf32, #tpu.memory_space<vmem>>, vector<26x26xf32>
    tpu.vector_store %arg6[%c544, %c0_43], %46 {strides = array<i32>} : memref<640x26xf32, #tpu.memory_space<vmem>>, vector<26x26xf32>,
    %48 = arith.mulf %43, %43 : vector<26x26xf32>
    %c576 = arith.constant 576 : index
    %c0_44 = arith.constant 0 : index
    %49 = vector.load %arg6[%c576, %c0_44] : memref<640x26xf32, #tpu.memory_space<vmem>>, vector<26x26xf32>
    tpu.vector_store %arg6[%c576, %c0_44], %48 {strides = array<i32>} : memref<640x26xf32, #tpu.memory_space<vmem>>, vector<26x26xf32>,
    %50 = arith.mulf %41, %43 : vector<26x26xf32>
    %c608 = arith.constant 608 : index
    %c0_45 = arith.constant 0 : index
    %51 = vector.load %arg6[%c608, %c0_45] : memref<640x26xf32, #tpu.memory_space<vmem>>, vector<26x26xf32>
    tpu.vector_store %arg6[%c608, %c0_45], %50 {strides = array<i32>} : memref<640x26xf32, #tpu.memory_space<vmem>>, vector<26x26xf32>,
    %c0_46 = arith.constant 0 : index
    %c0_47 = arith.constant 0 : index
    %52 = vector.load %arg6[%c0_46, %c0_47] : memref<640x26xf32, #tpu.memory_space<vmem>>, vector<640x26xf32>
    %c0_48 = arith.constant 0 : index
    %c0_49 = arith.constant 0 : index
    %53 = vector.load %arg4[%c0_48, %c0_49] : memref<26x16xf32, #tpu.memory_space<vmem>>, vector<26x16xf32>
    %cst_50 = arith.constant dense<0.000000e+00> : vector<640x16xf32>
    %54 = tpu.matmul %52, %53, %cst_50 {dimension_numbers = #tpu.dot_dimension_numbers<[1], [0], [0], [1], [0, 0, 1, 1], [], []>} : vector<640x26xf32>, vector<26x16xf32>, vector<640x16xf32> -> vector<640x16xf32>
    %c0_51 = arith.constant 0 : index
    %c0_52 = arith.constant 0 : index
    %55 = vector.load %arg7[%c0_51, %c0_52] : memref<640x16xf32, #tpu.memory_space<vmem>>, vector<640x16xf32>
    tpu.vector_store %arg7[%c0_51, %c0_52], %54 {strides = array<i32>} : memref<640x16xf32, #tpu.memory_space<vmem>>, vector<640x16xf32>,
    %c0_53 = arith.constant 0 : index
    %c0_54 = arith.constant 0 : index
    %56 = vector.load %arg3[%c0_53, %c0_54] : memref<16x32xf32, #tpu.memory_space<vmem>>, vector<16x32xf32>
    %c0_55 = arith.constant 0 : index
    %c0_56 = arith.constant 0 : index
    %57 = vector.load %arg7[%c0_55, %c0_56] : memref<640x16xf32, #tpu.memory_space<vmem>>, vector<32x16xf32>
    %cst_57 = arith.constant dense<0.000000e+00> : vector<16x16xf32>
    %58 = tpu.matmul %56, %57, %cst_57 {dimension_numbers = #tpu.dot_dimension_numbers<[1], [0], [0], [1], [0, 0, 1, 1], [], []>} : vector<16x32xf32>, vector<32x16xf32>, vector<16x16xf32> -> vector<16x16xf32>
    %c0_58 = arith.constant 0 : index
    %c0_59 = arith.constant 0 : index
    %59 = vector.load %arg3[%c0_58, %c0_59] : memref<16x32xf32, #tpu.memory_space<vmem>>, vector<16x32xf32>
    %c32_60 = arith.constant 32 : index
    %c0_61 = arith.constant 0 : index
    %60 = vector.load %arg7[%c32_60, %c0_61] : memref<640x16xf32, #tpu.memory_space<vmem>>, vector<32x16xf32>
    %cst_62 = arith.constant dense<0.000000e+00> : vector<16x16xf32>
    %61 = tpu.matmul %59, %60, %cst_62 {dimension_numbers = #tpu.dot_dimension_numbers<[1], [0], [0], [1], [0, 0, 1, 1], [], []>} : vector<16x32xf32>, vector<32x16xf32>, vector<16x16xf32> -> vector<16x16xf32>
    %c0_63 = arith.constant 0 : index
    %c0_64 = arith.constant 0 : index
    %62 = vector.load %arg3[%c0_63, %c0_64] : memref<16x32xf32, #tpu.memory_space<vmem>>, vector<16x32xf32>
    %c64_65 = arith.constant 64 : index
    %c0_66 = arith.constant 0 : index
    %63 = vector.load %arg7[%c64_65, %c0_66] : memref<640x16xf32, #tpu.memory_space<vmem>>, vector<32x16xf32>
    %cst_67 = arith.constant dense<0.000000e+00> : vector<16x16xf32>
    %64 = tpu.matmul %62, %63, %cst_67 {dimension_numbers = #tpu.dot_dimension_numbers<[1], [0], [0], [1], [0, 0, 1, 1], [], []>} : vector<16x32xf32>, vector<32x16xf32>, vector<16x16xf32> -> vector<16x16xf32>
    %c0_68 = arith.constant 0 : index
    %c0_69 = arith.constant 0 : index
    %65 = vector.load %arg3[%c0_68, %c0_69] : memref<16x32xf32, #tpu.memory_space<vmem>>, vector<16x32xf32>
    %c96_70 = arith.constant 96 : index
    %c0_71 = arith.constant 0 : index
    %66 = vector.load %arg7[%c96_70, %c0_71] : memref<640x16xf32, #tpu.memory_space<vmem>>, vector<32x16xf32>
    %cst_72 = arith.constant dense<0.000000e+00> : vector<16x16xf32>
    %67 = tpu.matmul %65, %66, %cst_72 {dimension_numbers = #tpu.dot_dimension_numbers<[1], [0], [0], [1], [0, 0, 1, 1], [], []>} : vector<16x32xf32>, vector<32x16xf32>, vector<16x16xf32> -> vector<16x16xf32>
    %c0_73 = arith.constant 0 : index
    %c0_74 = arith.constant 0 : index
    %68 = vector.load %arg3[%c0_73, %c0_74] : memref<16x32xf32, #tpu.memory_space<vmem>>, vector<16x32xf32>
    %c128_75 = arith.constant 128 : index
    %c0_76 = arith.constant 0 : index
    %69 = vector.load %arg7[%c128_75, %c0_76] : memref<640x16xf32, #tpu.memory_space<vmem>>, vector<32x16xf32>
    %cst_77 = arith.constant dense<0.000000e+00> : vector<16x16xf32>
    %70 = tpu.matmul %68, %69, %cst_77 {dimension_numbers = #tpu.dot_dimension_numbers<[1], [0], [0], [1], [0, 0, 1, 1], [], []>} : vector<16x32xf32>, vector<32x16xf32>, vector<16x16xf32> -> vector<16x16xf32>
    %71 = arith.mulf %58, %58 : vector<16x16xf32>
    %72 = arith.mulf %61, %61 : vector<16x16xf32>
    %73 = arith.mulf %58, %61 : vector<16x16xf32>
    %74 = arith.subf %64, %71 : vector<16x16xf32>
    %75 = arith.subf %67, %72 : vector<16x16xf32>
    %76 = arith.subf %70, %73 : vector<16x16xf32>
    %cst_78 = arith.constant 2.000000e+00 : f32
    %77 = vector.broadcast %cst_78 : f32 to vector<16x16xf32>
    %78 = arith.mulf %77, %73 : vector<16x16xf32>
    %cst_79 = arith.constant 9.99999974E-5 : f32
    %79 = vector.broadcast %cst_79 : f32 to vector<16x16xf32>
    %80 = arith.addf %78, %79 : vector<16x16xf32>
    %cst_80 = arith.constant 2.000000e+00 : f32
    %81 = vector.broadcast %cst_80 : f32 to vector<16x16xf32>
    %82 = arith.mulf %81, %76 : vector<16x16xf32>
    %cst_81 = arith.constant 8.99999984E-4 : f32
    %83 = vector.broadcast %cst_81 : f32 to vector<16x16xf32>
    %84 = arith.addf %82, %83 : vector<16x16xf32>
    %85 = arith.mulf %80, %84 : vector<16x16xf32>
    %86 = arith.addf %71, %72 : vector<16x16xf32>
    %cst_82 = arith.constant 9.99999974E-5 : f32
    %87 = vector.broadcast %cst_82 : f32 to vector<16x16xf32>
    %88 = arith.addf %86, %87 : vector<16x16xf32>
    %89 = arith.addf %74, %75 : vector<16x16xf32>
    %cst_83 = arith.constant 8.99999984E-4 : f32
    %90 = vector.broadcast %cst_83 : f32 to vector<16x16xf32>
    %91 = arith.addf %89, %90 : vector<16x16xf32>
    %92 = arith.mulf %88, %91 : vector<16x16xf32>
    %93 = tpu.reciprocal %92 {approx = true} : vector<16x16xf32> -> vector<16x16xf32>
    %94 = arith.mulf %92, %93 : vector<16x16xf32>
    %cst_84 = arith.constant 2.000000e+00 : f32
    %95 = vector.broadcast %cst_84 : f32 to vector<16x16xf32>
    %96 = arith.subf %95, %94 : vector<16x16xf32>
    %97 = arith.mulf %93, %96 : vector<16x16xf32>
    %98 = arith.mulf %85, %97 : vector<16x16xf32>
    %c0_85 = arith.constant 0 : index
    %c0_86 = arith.constant 0 : index
    %99 = vector.load %arg8[%c0_85, %c0_86] : memref<16x16xf32, #tpu.memory_space<vmem>>, vector<16x16xf32>
    %100 = arith.addf %99, %98 : vector<16x16xf32>
    %c0_87 = arith.constant 0 : index
    %c0_88 = arith.constant 0 : index
    %101 = vector.load %arg8[%c0_87, %c0_88] : memref<16x16xf32, #tpu.memory_space<vmem>>, vector<16x16xf32>
    tpu.vector_store %arg8[%c0_87, %c0_88], %100 {strides = array<i32>} : memref<16x16xf32, #tpu.memory_space<vmem>>, vector<16x16xf32>,
    %c0_89 = arith.constant 0 : index
    %c0_90 = arith.constant 0 : index
    %102 = vector.load %arg3[%c0_89, %c0_90] : memref<16x32xf32, #tpu.memory_space<vmem>>, vector<16x32xf32>
    %c160_91 = arith.constant 160 : index
    %c0_92 = arith.constant 0 : index
    %103 = vector.load %arg7[%c160_91, %c0_92] : memref<640x16xf32, #tpu.memory_space<vmem>>, vector<32x16xf32>
    %cst_93 = arith.constant dense<0.000000e+00> : vector<16x16xf32>
    %104 = tpu.matmul %102, %103, %cst_93 {dimension_numbers = #tpu.dot_dimension_numbers<[1], [0], [0], [1], [0, 0, 1, 1], [], []>} : vector<16x32xf32>, vector<32x16xf32>, vector<16x16xf32> -> vector<16x16xf32>
    %c0_94 = arith.constant 0 : index
    %c0_95 = arith.constant 0 : index
    %105 = vector.load %arg3[%c0_94, %c0_95] : memref<16x32xf32, #tpu.memory_space<vmem>>, vector<16x32xf32>
    %c192_96 = arith.constant 192 : index
    %c0_97 = arith.constant 0 : index
    %106 = vector.load %arg7[%c192_96, %c0_97] : memref<640x16xf32, #tpu.memory_space<vmem>>, vector<32x16xf32>
    %cst_98 = arith.constant dense<0.000000e+00> : vector<16x16xf32>
    %107 = tpu.matmul %105, %106, %cst_98 {dimension_numbers = #tpu.dot_dimension_numbers<[1], [0], [0], [1], [0, 0, 1, 1], [], []>} : vector<16x32xf32>, vector<32x16xf32>, vector<16x16xf32> -> vector<16x16xf32>
    %c0_99 = arith.constant 0 : index
    %c0_100 = arith.constant 0 : index
    %108 = vector.load %arg3[%c0_99, %c0_100] : memref<16x32xf32, #tpu.memory_space<vmem>>, vector<16x32xf32>
    %c224_101 = arith.constant 224 : index
    %c0_102 = arith.constant 0 : index
    %109 = vector.load %arg7[%c224_101, %c0_102] : memref<640x16xf32, #tpu.memory_space<vmem>>, vector<32x16xf32>
    %cst_103 = arith.constant dense<0.000000e+00> : vector<16x16xf32>
    %110 = tpu.matmul %108, %109, %cst_103 {dimension_numbers = #tpu.dot_dimension_numbers<[1], [0], [0], [1], [0, 0, 1, 1], [], []>} : vector<16x32xf32>, vector<32x16xf32>, vector<16x16xf32> -> vector<16x16xf32>
    %c0_104 = arith.constant 0 : index
    %c0_105 = arith.constant 0 : index
    %111 = vector.load %arg3[%c0_104, %c0_105] : memref<16x32xf32, #tpu.memory_space<vmem>>, vector<16x32xf32>
    %c256_106 = arith.constant 256 : index
    %c0_107 = arith.constant 0 : index
    %112 = vector.load %arg7[%c256_106, %c0_107] : memref<640x16xf32, #tpu.memory_space<vmem>>, vector<32x16xf32>
    %cst_108 = arith.constant dense<0.000000e+00> : vector<16x16xf32>
    %113 = tpu.matmul %111, %112, %cst_108 {dimension_numbers = #tpu.dot_dimension_numbers<[1], [0], [0], [1], [0, 0, 1, 1], [], []>} : vector<16x32xf32>, vector<32x16xf32>, vector<16x16xf32> -> vector<16x16xf32>
    %c0_109 = arith.constant 0 : index
    %c0_110 = arith.constant 0 : index
    %114 = vector.load %arg3[%c0_109, %c0_110] : memref<16x32xf32, #tpu.memory_space<vmem>>, vector<16x32xf32>
    %c288_111 = arith.constant 288 : index
    %c0_112 = arith.constant 0 : index
    %115 = vector.load %arg7[%c288_111, %c0_112] : memref<640x16xf32, #tpu.memory_space<vmem>>, vector<32x16xf32>
    %cst_113 = arith.constant dense<0.000000e+00> : vector<16x16xf32>
    %116 = tpu.matmul %114, %115, %cst_113 {dimension_numbers = #tpu.dot_dimension_numbers<[1], [0], [0], [1], [0, 0, 1, 1], [], []>} : vector<16x32xf32>, vector<32x16xf32>, vector<16x16xf32> -> vector<16x16xf32>
    %117 = arith.mulf %104, %104 : vector<16x16xf32>
    %118 = arith.mulf %107, %107 : vector<16x16xf32>
    %119 = arith.mulf %104, %107 : vector<16x16xf32>
    %120 = arith.subf %110, %117 : vector<16x16xf32>
    %121 = arith.subf %113, %118 : vector<16x16xf32>
    %122 = arith.subf %116, %119 : vector<16x16xf32>
    %cst_114 = arith.constant 2.000000e+00 : f32
    %123 = vector.broadcast %cst_114 : f32 to vector<16x16xf32>
    %124 = arith.mulf %123, %119 : vector<16x16xf32>
    %cst_115 = arith.constant 9.99999974E-5 : f32
    %125 = vector.broadcast %cst_115 : f32 to vector<16x16xf32>
    %126 = arith.addf %124, %125 : vector<16x16xf32>
    %cst_116 = arith.constant 2.000000e+00 : f32
    %127 = vector.broadcast %cst_116 : f32 to vector<16x16xf32>
    %128 = arith.mulf %127, %122 : vector<16x16xf32>
    %cst_117 = arith.constant 8.99999984E-4 : f32
    %129 = vector.broadcast %cst_117 : f32 to vector<16x16xf32>
    %130 = arith.addf %128, %129 : vector<16x16xf32>
    %131 = arith.mulf %126, %130 : vector<16x16xf32>
    %132 = arith.addf %117, %118 : vector<16x16xf32>
    %cst_118 = arith.constant 9.99999974E-5 : f32
    %133 = vector.broadcast %cst_118 : f32 to vector<16x16xf32>
    %134 = arith.addf %132, %133 : vector<16x16xf32>
    %135 = arith.addf %120, %121 : vector<16x16xf32>
    %cst_119 = arith.constant 8.99999984E-4 : f32
    %136 = vector.broadcast %cst_119 : f32 to vector<16x16xf32>
    %137 = arith.addf %135, %136 : vector<16x16xf32>
    %138 = arith.mulf %134, %137 : vector<16x16xf32>
    %139 = tpu.reciprocal %138 {approx = true} : vector<16x16xf32> -> vector<16x16xf32>
    %140 = arith.mulf %138, %139 : vector<16x16xf32>
    %cst_120 = arith.constant 2.000000e+00 : f32
    %141 = vector.broadcast %cst_120 : f32 to vector<16x16xf32>
    %142 = arith.subf %141, %140 : vector<16x16xf32>
    %143 = arith.mulf %139, %142 : vector<16x16xf32>
    %144 = arith.mulf %131, %143 : vector<16x16xf32>
    %c0_121 = arith.constant 0 : index
    %c0_122 = arith.constant 0 : index
    %145 = vector.load %arg8[%c0_121, %c0_122] : memref<16x16xf32, #tpu.memory_space<vmem>>, vector<16x16xf32>
    %146 = arith.addf %145, %144 : vector<16x16xf32>
    %c0_123 = arith.constant 0 : index
    %c0_124 = arith.constant 0 : index
    %147 = vector.load %arg8[%c0_123, %c0_124] : memref<16x16xf32, #tpu.memory_space<vmem>>, vector<16x16xf32>
    tpu.vector_store %arg8[%c0_123, %c0_124], %146 {strides = array<i32>} : memref<16x16xf32, #tpu.memory_space<vmem>>, vector<16x16xf32>,
    %c0_125 = arith.constant 0 : index
    %c0_126 = arith.constant 0 : index
    %148 = vector.load %arg3[%c0_125, %c0_126] : memref<16x32xf32, #tpu.memory_space<vmem>>, vector<16x32xf32>
    %c320_127 = arith.constant 320 : index
    %c0_128 = arith.constant 0 : index
    %149 = vector.load %arg7[%c320_127, %c0_128] : memref<640x16xf32, #tpu.memory_space<vmem>>, vector<32x16xf32>
    %cst_129 = arith.constant dense<0.000000e+00> : vector<16x16xf32>
    %150 = tpu.matmul %148, %149, %cst_129 {dimension_numbers = #tpu.dot_dimension_numbers<[1], [0], [0], [1], [0, 0, 1, 1], [], []>} : vector<16x32xf32>, vector<32x16xf32>, vector<16x16xf32> -> vector<16x16xf32>
    %c0_130 = arith.constant 0 : index
    %c0_131 = arith.constant 0 : index
    %151 = vector.load %arg3[%c0_130, %c0_131] : memref<16x32xf32, #tpu.memory_space<vmem>>, vector<16x32xf32>
    %c352_132 = arith.constant 352 : index
    %c0_133 = arith.constant 0 : index
    %152 = vector.load %arg7[%c352_132, %c0_133] : memref<640x16xf32, #tpu.memory_space<vmem>>, vector<32x16xf32>
    %cst_134 = arith.constant dense<0.000000e+00> : vector<16x16xf32>
    %153 = tpu.matmul %151, %152, %cst_134 {dimension_numbers = #tpu.dot_dimension_numbers<[1], [0], [0], [1], [0, 0, 1, 1], [], []>} : vector<16x32xf32>, vector<32x16xf32>, vector<16x16xf32> -> vector<16x16xf32>
    %c0_135 = arith.constant 0 : index
    %c0_136 = arith.constant 0 : index
    %154 = vector.load %arg3[%c0_135, %c0_136] : memref<16x32xf32, #tpu.memory_space<vmem>>, vector<16x32xf32>
    %c384_137 = arith.constant 384 : index
    %c0_138 = arith.constant 0 : index
    %155 = vector.load %arg7[%c384_137, %c0_138] : memref<640x16xf32, #tpu.memory_space<vmem>>, vector<32x16xf32>
    %cst_139 = arith.constant dense<0.000000e+00> : vector<16x16xf32>
    %156 = tpu.matmul %154, %155, %cst_139 {dimension_numbers = #tpu.dot_dimension_numbers<[1], [0], [0], [1], [0, 0, 1, 1], [], []>} : vector<16x32xf32>, vector<32x16xf32>, vector<16x16xf32> -> vector<16x16xf32>
    %c0_140 = arith.constant 0 : index
    %c0_141 = arith.constant 0 : index
    %157 = vector.load %arg3[%c0_140, %c0_141] : memref<16x32xf32, #tpu.memory_space<vmem>>, vector<16x32xf32>
    %c416_142 = arith.constant 416 : index
    %c0_143 = arith.constant 0 : index
    %158 = vector.load %arg7[%c416_142, %c0_143] : memref<640x16xf32, #tpu.memory_space<vmem>>, vector<32x16xf32>
    %cst_144 = arith.constant dense<0.000000e+00> : vector<16x16xf32>
    %159 = tpu.matmul %157, %158, %cst_144 {dimension_numbers = #tpu.dot_dimension_numbers<[1], [0], [0], [1], [0, 0, 1, 1], [], []>} : vector<16x32xf32>, vector<32x16xf32>, vector<16x16xf32> -> vector<16x16xf32>
    %c0_145 = arith.constant 0 : index
    %c0_146 = arith.constant 0 : index
    %160 = vector.load %arg3[%c0_145, %c0_146] : memref<16x32xf32, #tpu.memory_space<vmem>>, vector<16x32xf32>
    %c448_147 = arith.constant 448 : index
    %c0_148 = arith.constant 0 : index
    %161 = vector.load %arg7[%c448_147, %c0_148] : memref<640x16xf32, #tpu.memory_space<vmem>>, vector<32x16xf32>
    %cst_149 = arith.constant dense<0.000000e+00> : vector<16x16xf32>
    %162 = tpu.matmul %160, %161, %cst_149 {dimension_numbers = #tpu.dot_dimension_numbers<[1], [0], [0], [1], [0, 0, 1, 1], [], []>} : vector<16x32xf32>, vector<32x16xf32>, vector<16x16xf32> -> vector<16x16xf32>
    %163 = arith.mulf %150, %150 : vector<16x16xf32>
    %164 = arith.mulf %153, %153 : vector<16x16xf32>
    %165 = arith.mulf %150, %153 : vector<16x16xf32>
    %166 = arith.subf %156, %163 : vector<16x16xf32>
    %167 = arith.subf %159, %164 : vector<16x16xf32>
    %168 = arith.subf %162, %165 : vector<16x16xf32>
    %cst_150 = arith.constant 2.000000e+00 : f32
    %169 = vector.broadcast %cst_150 : f32 to vector<16x16xf32>
    %170 = arith.mulf %169, %165 : vector<16x16xf32>
    %cst_151 = arith.constant 9.99999974E-5 : f32
    %171 = vector.broadcast %cst_151 : f32 to vector<16x16xf32>
    %172 = arith.addf %170, %171 : vector<16x16xf32>
    %cst_152 = arith.constant 2.000000e+00 : f32
    %173 = vector.broadcast %cst_152 : f32 to vector<16x16xf32>
    %174 = arith.mulf %173, %168 : vector<16x16xf32>
    %cst_153 = arith.constant 8.99999984E-4 : f32
    %175 = vector.broadcast %cst_153 : f32 to vector<16x16xf32>
    %176 = arith.addf %174, %175 : vector<16x16xf32>
    %177 = arith.mulf %172, %176 : vector<16x16xf32>
    %178 = arith.addf %163, %164 : vector<16x16xf32>
    %cst_154 = arith.constant 9.99999974E-5 : f32
    %179 = vector.broadcast %cst_154 : f32 to vector<16x16xf32>
    %180 = arith.addf %178, %179 : vector<16x16xf32>
    %181 = arith.addf %166, %167 : vector<16x16xf32>
    %cst_155 = arith.constant 8.99999984E-4 : f32
    %182 = vector.broadcast %cst_155 : f32 to vector<16x16xf32>
    %183 = arith.addf %181, %182 : vector<16x16xf32>
    %184 = arith.mulf %180, %183 : vector<16x16xf32>
    %185 = tpu.reciprocal %184 {approx = true} : vector<16x16xf32> -> vector<16x16xf32>
    %186 = arith.mulf %184, %185 : vector<16x16xf32>
    %cst_156 = arith.constant 2.000000e+00 : f32
    %187 = vector.broadcast %cst_156 : f32 to vector<16x16xf32>
    %188 = arith.subf %187, %186 : vector<16x16xf32>
    %189 = arith.mulf %185, %188 : vector<16x16xf32>
    %190 = arith.mulf %177, %189 : vector<16x16xf32>
    %c0_157 = arith.constant 0 : index
    %c0_158 = arith.constant 0 : index
    %191 = vector.load %arg8[%c0_157, %c0_158] : memref<16x16xf32, #tpu.memory_space<vmem>>, vector<16x16xf32>
    %192 = arith.addf %191, %190 : vector<16x16xf32>
    %c0_159 = arith.constant 0 : index
    %c0_160 = arith.constant 0 : index
    %193 = vector.load %arg8[%c0_159, %c0_160] : memref<16x16xf32, #tpu.memory_space<vmem>>, vector<16x16xf32>
    tpu.vector_store %arg8[%c0_159, %c0_160], %192 {strides = array<i32>} : memref<16x16xf32, #tpu.memory_space<vmem>>, vector<16x16xf32>,
    %c0_161 = arith.constant 0 : index
    %c0_162 = arith.constant 0 : index
    %194 = vector.load %arg3[%c0_161, %c0_162] : memref<16x32xf32, #tpu.memory_space<vmem>>, vector<16x32xf32>
    %c480_163 = arith.constant 480 : index
    %c0_164 = arith.constant 0 : index
    %195 = vector.load %arg7[%c480_163, %c0_164] : memref<640x16xf32, #tpu.memory_space<vmem>>, vector<32x16xf32>
    %cst_165 = arith.constant dense<0.000000e+00> : vector<16x16xf32>
    %196 = tpu.matmul %194, %195, %cst_165 {dimension_numbers = #tpu.dot_dimension_numbers<[1], [0], [0], [1], [0, 0, 1, 1], [], []>} : vector<16x32xf32>, vector<32x16xf32>, vector<16x16xf32> -> vector<16x16xf32>
    %c0_166 = arith.constant 0 : index
    %c0_167 = arith.constant 0 : index
    %197 = vector.load %arg3[%c0_166, %c0_167] : memref<16x32xf32, #tpu.memory_space<vmem>>, vector<16x32xf32>
    %c512_168 = arith.constant 512 : index
    %c0_169 = arith.constant 0 : index
    %198 = vector.load %arg7[%c512_168, %c0_169] : memref<640x16xf32, #tpu.memory_space<vmem>>, vector<32x16xf32>
    %cst_170 = arith.constant dense<0.000000e+00> : vector<16x16xf32>
    %199 = tpu.matmul %197, %198, %cst_170 {dimension_numbers = #tpu.dot_dimension_numbers<[1], [0], [0], [1], [0, 0, 1, 1], [], []>} : vector<16x32xf32>, vector<32x16xf32>, vector<16x16xf32> -> vector<16x16xf32>
    %c0_171 = arith.constant 0 : index
    %c0_172 = arith.constant 0 : index
    %200 = vector.load %arg3[%c0_171, %c0_172] : memref<16x32xf32, #tpu.memory_space<vmem>>, vector<16x32xf32>
    %c544_173 = arith.constant 544 : index
    %c0_174 = arith.constant 0 : index
    %201 = vector.load %arg7[%c544_173, %c0_174] : memref<640x16xf32, #tpu.memory_space<vmem>>, vector<32x16xf32>
    %cst_175 = arith.constant dense<0.000000e+00> : vector<16x16xf32>
    %202 = tpu.matmul %200, %201, %cst_175 {dimension_numbers = #tpu.dot_dimension_numbers<[1], [0], [0], [1], [0, 0, 1, 1], [], []>} : vector<16x32xf32>, vector<32x16xf32>, vector<16x16xf32> -> vector<16x16xf32>
    %c0_176 = arith.constant 0 : index
    %c0_177 = arith.constant 0 : index
    %203 = vector.load %arg3[%c0_176, %c0_177] : memref<16x32xf32, #tpu.memory_space<vmem>>, vector<16x32xf32>
    %c576_178 = arith.constant 576 : index
    %c0_179 = arith.constant 0 : index
    %204 = vector.load %arg7[%c576_178, %c0_179] : memref<640x16xf32, #tpu.memory_space<vmem>>, vector<32x16xf32>
    %cst_180 = arith.constant dense<0.000000e+00> : vector<16x16xf32>
    %205 = tpu.matmul %203, %204, %cst_180 {dimension_numbers = #tpu.dot_dimension_numbers<[1], [0], [0], [1], [0, 0, 1, 1], [], []>} : vector<16x32xf32>, vector<32x16xf32>, vector<16x16xf32> -> vector<16x16xf32>
    %c0_181 = arith.constant 0 : index
    %c0_182 = arith.constant 0 : index
    %206 = vector.load %arg3[%c0_181, %c0_182] : memref<16x32xf32, #tpu.memory_space<vmem>>, vector<16x32xf32>
    %c608_183 = arith.constant 608 : index
    %c0_184 = arith.constant 0 : index
    %207 = vector.load %arg7[%c608_183, %c0_184] : memref<640x16xf32, #tpu.memory_space<vmem>>, vector<32x16xf32>
    %cst_185 = arith.constant dense<0.000000e+00> : vector<16x16xf32>
    %208 = tpu.matmul %206, %207, %cst_185 {dimension_numbers = #tpu.dot_dimension_numbers<[1], [0], [0], [1], [0, 0, 1, 1], [], []>} : vector<16x32xf32>, vector<32x16xf32>, vector<16x16xf32> -> vector<16x16xf32>
    %209 = arith.mulf %196, %196 : vector<16x16xf32>
    %210 = arith.mulf %199, %199 : vector<16x16xf32>
    %211 = arith.mulf %196, %199 : vector<16x16xf32>
    %212 = arith.subf %202, %209 : vector<16x16xf32>
    %213 = arith.subf %205, %210 : vector<16x16xf32>
    %214 = arith.subf %208, %211 : vector<16x16xf32>
    %cst_186 = arith.constant 2.000000e+00 : f32
    %215 = vector.broadcast %cst_186 : f32 to vector<16x16xf32>
    %216 = arith.mulf %215, %211 : vector<16x16xf32>
    %cst_187 = arith.constant 9.99999974E-5 : f32
    %217 = vector.broadcast %cst_187 : f32 to vector<16x16xf32>
    %218 = arith.addf %216, %217 : vector<16x16xf32>
    %cst_188 = arith.constant 2.000000e+00 : f32
    %219 = vector.broadcast %cst_188 : f32 to vector<16x16xf32>
    %220 = arith.mulf %219, %214 : vector<16x16xf32>
    %cst_189 = arith.constant 8.99999984E-4 : f32
    %221 = vector.broadcast %cst_189 : f32 to vector<16x16xf32>
    %222 = arith.addf %220, %221 : vector<16x16xf32>
    %223 = arith.mulf %218, %222 : vector<16x16xf32>
    %224 = arith.addf %209, %210 : vector<16x16xf32>
    %cst_190 = arith.constant 9.99999974E-5 : f32
    %225 = vector.broadcast %cst_190 : f32 to vector<16x16xf32>
    %226 = arith.addf %224, %225 : vector<16x16xf32>
    %227 = arith.addf %212, %213 : vector<16x16xf32>
    %cst_191 = arith.constant 8.99999984E-4 : f32
    %228 = vector.broadcast %cst_191 : f32 to vector<16x16xf32>
    %229 = arith.addf %227, %228 : vector<16x16xf32>
    %230 = arith.mulf %226, %229 : vector<16x16xf32>
    %231 = tpu.reciprocal %230 {approx = true} : vector<16x16xf32> -> vector<16x16xf32>
    %232 = arith.mulf %230, %231 : vector<16x16xf32>
    %cst_192 = arith.constant 2.000000e+00 : f32
    %233 = vector.broadcast %cst_192 : f32 to vector<16x16xf32>
    %234 = arith.subf %233, %232 : vector<16x16xf32>
    %235 = arith.mulf %231, %234 : vector<16x16xf32>
    %236 = arith.mulf %223, %235 : vector<16x16xf32>
    %c0_193 = arith.constant 0 : index
    %c0_194 = arith.constant 0 : index
    %237 = vector.load %arg8[%c0_193, %c0_194] : memref<16x16xf32, #tpu.memory_space<vmem>>, vector<16x16xf32>
    %238 = arith.addf %237, %236 : vector<16x16xf32>
    %c0_195 = arith.constant 0 : index
    %c0_196 = arith.constant 0 : index
    %239 = vector.load %arg8[%c0_195, %c0_196] : memref<16x16xf32, #tpu.memory_space<vmem>>, vector<16x16xf32>
    tpu.vector_store %arg8[%c0_195, %c0_196], %238 {strides = array<i32>} : memref<16x16xf32, #tpu.memory_space<vmem>>, vector<16x16xf32>,
    %cst_197 = arith.constant 0.000000e+00 : f32
    %240 = vector.broadcast %cst_197 : f32 to vector<1x1x128xf32>
    %c0_198 = arith.constant 0 : index
    %c0_199 = arith.constant 0 : index
    %241 = vector.load %arg8[%c0_198, %c0_199] : memref<16x16xf32, #tpu.memory_space<vmem>>, vector<16x16xf32>
    %242 = vector.shape_cast %241 : vector<16x16xf32> to vector<1x16x16xf32>
    %cst_200 = arith.constant dense<0.000000e+00> : vector<1xf32>
    %243 = vector.multi_reduction <add>, %242, %cst_200 [1, 2] : vector<1x16x16xf32> to vector<1xf32>
    %244 = vector.shape_cast %243 : vector<1xf32> to vector<1x1x1xf32>
    %245 = vector.extract %244[0, 0, 0] : f32 from vector<1x1x1xf32>
    %246 = vector.broadcast %245 : f32 to vector<1x1x128xf32>
    %247 = arith.addf %240, %246 : vector<1x1x128xf32>
    %c0_201 = arith.constant 0 : index
    %c0_202 = arith.constant 0 : index
    %c0_203 = arith.constant 0 : index
    %248 = vector.load %arg5[%c0_201, %c0_202, %c0_203] : memref<1x1x128xf32, #tpu.memory_space<vmem>>, vector<1x1x128xf32>
    tpu.vector_store %arg5[%c0_201, %c0_202, %c0_203], %247 {strides = array<i32>} : memref<1x1x128xf32, #tpu.memory_space<vmem>>, vector<1x1x128xf32>,
    return
  }
  func.func @transform_0(%arg0: i32) -> (i32, i32, i32) {
    %c0_i32 = arith.constant 0 : i32
    %c0_i32_0 = arith.constant 0 : i32
    %c0_i32_1 = arith.constant 0 : i32
    return %arg0, %c0_i32, %c0_i32_0 : i32, i32, i32
  }
  func.func @transform_1(%arg0: i32) -> (i32, i32, i32) {
    %c0_i32 = arith.constant 0 : i32
    %c0_i32_0 = arith.constant 0 : i32
    %c0_i32_1 = arith.constant 0 : i32
    return %arg0, %c0_i32, %c0_i32_0 : i32, i32, i32
  }
  func.func @transform_2(%arg0: i32) -> (i32, i32) {
    %c0_i32 = arith.constant 0 : i32
    %c0_i32_0 = arith.constant 0 : i32
    %c0_i32_1 = arith.constant 0 : i32
    return %c0_i32, %c0_i32_0 : i32, i32
  }
  func.func @transform_3(%arg0: i32) -> (i32, i32) {
    %c0_i32 = arith.constant 0 : i32
    %c0_i32_0 = arith.constant 0 : i32
    %c0_i32_1 = arith.constant 0 : i32
    return %c0_i32, %c0_i32_0 : i32, i32
  }
  func.func @transform_4(%arg0: i32) -> (i32, i32, i32) {
    %c0_i32 = arith.constant 0 : i32
    %c0_i32_0 = arith.constant 0 : i32
    %c0_i32_1 = arith.constant 0 : i32
    return %arg0, %c0_i32, %c0_i32_0 : i32, i32, i32
  }
}

</mosaic_0001>

<bundles_post_ra>
// kernel: tpu_custom_call.1
= control target key start
LH: loop header
LB: loop body
LE: loop exit
PB: predicated region body
PF: predicated region fallthrough
CT: control target
= control target key end

     0   :  { %9 = vsyncpa [#allocation6], 0  ;;  %s4775_s0 = inlined_call_operand.vmem [shape: f32[8,26,26], index: 0, kind: input, shape index: {}]   ;;  %s4776_s1 = inlined_call_operand.vmem [shape: f32[8,26,26], index: 1, kind: input, shape index: {}]   ;;  %s4777_s2 = inlined_call_operand.vmem [shape: f32[16,32], index: 2, kind: input, shape index: {}]   ;;  %s4778_s3 = inlined_call_operand.vmem [shape: f32[26,16], index: 3, kind: input, shape index: {}]   ;;  %s4779_s4 = inlined_call_operand.hbm [shape: f32[2,1,128], index: 4, kind: output, shape index: {}]  }
   0x1   :  { %11 = vsyncpa [#allocation6 + $0x1], 0  ;;  %s4110_s15 = smov 0   ;;  %s4112_s16 = smov 0  }
   0x2   :  { %s4114_s17 = smov 0   ;;  %s4116_s18 = smov 0  }
   0x3 LB: > { %s4131_s19 = sadd.s32 4294967295, %s4081_s18   ;;  %s3251_s20 = sadd.s32 4294967294, %s4081_s18   ;;  %s4081_s18 = sphi %s4116_s18, %s4786_s18   ;;  %s4077_s17 = sphi %s4114_s17, %s4785_s17   ;;  %s4073_s16 = sphi %s4112_s16, %s4784_s16   ;;  %s4069_s15 = sphi %s4110_s15, %s4783_s15  }
   0x4   : > { %s4135_s21 = sadd.s32 1, %s4081_s18   ;;  %s118_s22 = sadd.s32 1, %s4077_s17 }
   0x5   : > { %s115_s23 = ssub.s32 %s4081_s18, %s4135_s21  ;;  %p128_p0 = scmp.ne.s32.totalorder %s4077_s17, %s4073_s16 }
   0x6   : > { %p116_p1 = scmp.eq.s32.totalorder %s115_s23, 0  ;;  %p129_p2 = scmp.eq.s32.totalorder %s4131_s19, 1 }
   0x7   : > { %p134_p3 = scmp.ne.s32.totalorder %s4073_s16, %s4069_s15  ;;  %p135_p4 = scmp.eq.s32.totalorder %s3251_s20, 1 }
   0x8   : > { %s4146_s24 = scalar_select %p116_p1, %s4077_s17, %s118_s22  }
   0x9   : > { %p4148_p5 = por %p129_p2, %p128_p0  ;;  %p4152_p6 = por %p135_p4, %p134_p3 }
   0xa   : > { %p3254_p7 = scmp.ge.s32.totalorder %s4081_s18, 1  ;;  %p179_p8 = scmp.lt.s32.totalorder %s4081_s18, 3 }
   0xc   : > { %p180_p9 = pnand %p3254_p7, %p179_p8 }
   0xd   : > { %s3255_s5 = sshll.u32 (!%p180_p9), %s4131_s19, 2  ;;  %s3406_s8 = sshll.u32 (!%p180_p9), %s4131_s19, 4 }
   0xe   : > { %183 = sbr.rel (%p180_p9) target bundleno = 879 (0x36f), region = 36  ;;  %p4169_p10 = scmp.lt.s32.totalorder (!%p180_p9), %s3255_s5, 7 }
   0xf   : > { %s3182_s12 = scalar_lea.hbm (!%p180_p9), %s4779_s4, %s3406_s8  ;;  %s4084_s20 = smov (!%p180_p9), [#allocation5]  }
  0x10   : > { %s4025_s19 = sshll.u32 (!%p180_p9), %s4084_s20, 4  ;;  %s4026_s19 = int_to_ptr.vmem [resolvable:$false] %s4025_s19 }
  0x11   : > { %s4027_s22 = scalar_lea.vmem (!%p180_p9), %s4026_s19, 32 }
  0x13   : > { %v559_v0 = vld [vmem:[%s4778_s3 + $0x18] sm:$0x3]  ;;  %vm800_vm0 = vcmask 1041408   ;;  %v4164_v1 = vld [vmem:[%s4778_s3 + $0x10] sm:$0xff]  ;;  %vm225_vm1 = vcmask 211968   ;;  %v4176_v2 = vld [vmem:[%s4778_s3 + $0x8] sm:$0xff] }
  0x14   : > { %3615 = vmatprep.subr.msk.mxu0 %vm800_vm0, %v559_v0  ;;  %v4083_v3 = vmov 0.0   ;;  %s4788_s5 = smov (!%p4169_p10, %s3255_s5), 7  ;;  %v556_v4 = vld [vmem:[%s4778_s3] sm:$0xff]  ;;  %vm320_vm2 = vcmask 205824   ;;  %vm306_vm3 = vcmask 130048   ;;  %vm1355_vm4 = vcmask 261120  }
  0x15   : > { %3616 = vmatpush3.msk.msra.mxu0 %vm800_vm0, %v559_v0  ;;  %226 = vst.msk [vmem:[#allocation2] sm:$0xff] %vm225_vm1, %v4083_v3  ;;  %227 = vst.msk [vmem:[#allocation2 + $0x8] sm:$0xff] %vm225_vm1, %v4083_v3  ;;  %s3409_s11 = sshll.u32 %s4788_s5, 5  ;;  %s209_s5 = sand.u32 1, %s4073_s16  }
  0x16   : > { %228 = vst.msk [vmem:[#allocation2 + $0x10] sm:$0xff] %vm225_vm1, %v4083_v3  ;;  %229 = vst.msk [vmem:[#allocation2 + $0x18] sm:$0xff] %vm225_vm1, %v4083_v3  ;;  %3617 = vmatprep.subr.mxu0 %v4164_v1  ;;  %s4352_s14 = scalar_lea.vmem %s4775_s0, %s3409_s11  ;;  %s4357_s23 = scalar_lea.vmem %s4776_s1, %s3409_s11 }
  0x17   : > { %230 = vst.msk [vmem:[#allocation2 + $0x20] sm:$0xff] %vm225_vm1, %v4083_v3  ;;  %231 = vst.msk [vmem:[#allocation2 + $0x28] sm:$0xff] %vm225_vm1, %v4083_v3  ;;  %3618 = vmatpush3.msra.mxu0 %v4164_v1  ;;  %v309_v5 = vld [vmem:[%s4352_s14] sm:$0xff]  ;;  %v310_v7 = vld [vmem:[%s4352_s14 + $0x8] sm:$0xff]  ;;  %s210_s6 = scalar_lea.vmem [#allocation5], %s209_s5  ;;  %s3172_s13 = scalar_lea.sflag [#allocation6], %s209_s5 }
  0x18   : > { %232 = vst.msk [vmem:[#allocation2 + $0x30] sm:$0xff] %vm225_vm1, %v4083_v3  ;;  %233 = vst.msk [vmem:[#allocation2 + $0x38] sm:$0xff] %vm225_vm1, %v4083_v3  ;;  %3619 = vmatprep.subr.mxu0 %v4176_v2  ;;  %v313_v6 = vld [vmem:[%s4357_s23] sm:$0xff]  ;;  %v326_v8 = vmul.f32 %v309_v5, %v309_v5  ;;  %v311_v10 = vld [vmem:[%s4352_s14 + $0x10] sm:$0xff]  ;;  %v327_v13 = vmul.f32 %v310_v7, %v310_v7  ;;  %s3184_s7 = sshll.u32 %s210_s6, 4  ;;  %s4737_s7 = int_to_ptr.vmem [resolvable:$true] %s3184_s7 }
  0x19   : > { %234 = vst.msk [vmem:[#allocation2 + $0x40] sm:$0xff] %vm225_vm1, %v4083_v3  ;;  %235 = vst.msk [vmem:[#allocation2 + $0x48] sm:$0xff] %vm225_vm1, %v4083_v3  ;;  %3620 = vmatpush3.msra.mxu0 %v4176_v2  ;;  %v342_v9 = vmul.f32 %v313_v6, %v309_v5  ;;  %v312_v11 = vld [vmem:[%s4352_s14 + $0x18] sm:$0x3]  ;;  %v314_v12 = vld [vmem:[%s4357_s23 + $0x8] sm:$0xff]  ;;  %v334_v14 = vmul.f32 %v313_v6, %v313_v6  ;;  %v328_v17 = vmul.f32 %v311_v10, %v311_v10  ;;  %p4028_p0 = scmp.lt.s32.totalorder %s4737_s7, %s4026_s19 }
  0x1a   : > { %236 = vst.msk [vmem:[#allocation2 + $0x50] sm:$0xff] %vm225_vm1, %v4083_v3  ;;  %237 = vst.msk [vmem:[#allocation2 + $0x58] sm:$0xff] %vm225_vm1, %v4083_v3  ;;  %3621 = vmatprep.subr.mxu0 %v556_v4  ;;  %v315_v15 = vld [vmem:[%s4357_s23 + $0x10] sm:$0xff]  ;;  %v316_v16 = vld [vmem:[%s4357_s23 + $0x18] sm:$0x3]  ;;  %v329_v18 = vmul.f32 %v312_v11, %v312_v11  ;;  %v335_v19 = vmul.f32 %v314_v12, %v314_v12  ;;  %v343_v20 = vmul.f32 %v314_v12, %v310_v7 }
  0x1b   : > { %238 = vst.msk [vmem:[#allocation2 + $0x60] sm:$0xff] %vm225_vm1, %v4083_v3  ;;  %239 = vst.msk [vmem:[#allocation2 + $0x68] sm:$0xff] %vm225_vm1, %v4083_v3  ;;  %3622 = vmatpush3.msra.mxu0 %v556_v4  ;;  %v3261_v21 = vld [vmem:[%s4352_s14 + $0x20] sm:$0xff]  ;;  %v336_v22 = vmul.f32 %v315_v15, %v315_v15  ;;  %v337_v23 = vmul.f32 %v316_v16, %v316_v16  ;;  %v344_v24 = vmul.f32 %v315_v15, %v311_v10  ;;  %v3262_v26 = vld [vmem:[%s4352_s14 + $0x28] sm:$0xff] }
  0x1c   : > { %240 = vst.msk [vmem:[#allocation2 + $0x70] sm:$0xff] %vm225_vm1, %v4083_v3  ;;  %241 = vst.msk [vmem:[#allocation2 + $0x78] sm:$0xff] %vm225_vm1, %v4083_v3  ;;  %v345_v25 = vmul.f32 %v316_v16, %v312_v11  ;;  %v3263_v27 = vld [vmem:[%s4352_s14 + $0x30] sm:$0xff]  ;;  %v3264_v28 = vld [vmem:[%s4352_s14 + $0x38] sm:$0x3]  ;;  %v368_v32 = vmul.f32 %v3261_v21, %v3261_v21  ;;  %v369_v33 = vmul.f32 %v3262_v26, %v3262_v26 }
  0x1d   : > { %242 = vst.msk [vmem:[#allocation2 + $0x80] sm:$0xff] %vm225_vm1, %v4083_v3  ;;  %243 = vst.msk [vmem:[#allocation2 + $0x88] sm:$0xff] %vm225_vm1, %v4083_v3  ;;  %v3265_v29 = vld [vmem:[%s4357_s23 + $0x20] sm:$0xff]  ;;  %v3266_v30 = vld [vmem:[%s4357_s23 + $0x28] sm:$0xff]  ;;  %v370_v34 = vmul.f32 %v3263_v27, %v3263_v27  ;;  %v371_v35 = vmul.f32 %v3264_v28, %v3264_v28 }
  0x1e   : > { %244 = vst.msk [vmem:[#allocation2 + $0x90] sm:$0xff] %vm225_vm1, %v4083_v3  ;;  %245 = vst.msk [vmem:[#allocation2 + $0x98] sm:$0xff] %vm225_vm1, %v4083_v3  ;;  %v3267_v31 = vld [vmem:[%s4357_s23 + $0x30] sm:$0xff]  ;;  %v3268_v36 = vld [vmem:[%s4357_s23 + $0x38] sm:$0x3]  ;;  %v376_v37 = vmul.f32 %v3265_v29, %v3265_v29  ;;  %v377_v38 = vmul.f32 %v3266_v30, %v3266_v30  ;;  %v384_v40 = vmul.f32 %v3265_v29, %v3261_v21 }
  0x1f   : > { %246 = vst.msk [vmem:[#allocation2 + $0xa0] sm:$0xff] %vm225_vm1, %v4083_v3  ;;  %247 = vst.msk [vmem:[#allocation2 + $0xa8] sm:$0xff] %vm225_vm1, %v4083_v3  ;;  %v378_v39 = vmul.f32 %v3267_v31, %v3267_v31  ;;  %v3269_v41 = vld [vmem:[%s4352_s14 + $0x40] sm:$0xff]  ;;  %v3270_v42 = vld [vmem:[%s4352_s14 + $0x48] sm:$0xff]  ;;  %v379_v43 = vmul.f32 %v3268_v36, %v3268_v36  ;;  %v385_v44 = vmul.f32 %v3266_v30, %v3262_v26 }
  0x20   : > { %248 = vst.msk [vmem:[#allocation2 + $0xb0] sm:$0xff] %vm225_vm1, %v4083_v3  ;;  %249 = vst.msk [vmem:[#allocation2 + $0xb8] sm:$0xff] %vm225_vm1, %v4083_v3  ;;  %v386_v45 = vmul.f32 %v3267_v31, %v3263_v27  ;;  %v387_v46 = vmul.f32 %v3268_v36, %v3264_v28  ;;  %v3271_v47 = vld [vmem:[%s4352_s14 + $0x50] sm:$0xff]  ;;  %v3272_v48 = vld [vmem:[%s4352_s14 + $0x58] sm:$0x3]  ;;  %v410_v53 = vmul.f32 %v3269_v41, %v3269_v41 }
  0x21   : > { %250 = vst.msk [vmem:[#allocation2 + $0xc0] sm:$0xff] %vm225_vm1, %v4083_v3  ;;  %251 = vst.msk [vmem:[#allocation2 + $0xc8] sm:$0xff] %vm225_vm1, %v4083_v3  ;;  %v3273_v49 = vld [vmem:[%s4357_s23 + $0x40] sm:$0xff]  ;;  %v3274_v50 = vld [vmem:[%s4357_s23 + $0x48] sm:$0xff]  ;;  %v411_v54 = vmul.f32 %v3270_v42, %v3270_v42  ;;  %v412_v55 = vmul.f32 %v3271_v47, %v3271_v47  ;;  %v413_v56 = vmul.f32 %v3272_v48, %v3272_v48 }
  0x22   : > { %252 = vst.msk [vmem:[#allocation2 + $0xd0] sm:$0xff] %vm225_vm1, %v4083_v3  ;;  %253 = vst.msk [vmem:[#allocation2 + $0xd8] sm:$0xff] %vm225_vm1, %v4083_v3  ;;  %v3275_v51 = vld [vmem:[%s4357_s23 + $0x50] sm:$0xff]  ;;  %v3276_v52 = vld [vmem:[%s4357_s23 + $0x58] sm:$0x3]  ;;  %v418_v59 = vmul.f32 %v3273_v49, %v3273_v49  ;;  %v419_v60 = vmul.f32 %v3274_v50, %v3274_v50  ;;  %v426_v0 = vmul.f32 %v3273_v49, %v3269_v41 }
  0x23   : > { %254 = vst.msk [vmem:[#allocation2 + $0xe0] sm:$0xff] %vm225_vm1, %v4083_v3  ;;  %255 = vst.msk [vmem:[#allocation2 + $0xe8] sm:$0xff] %vm225_vm1, %v4083_v3  ;;  %v420_v61 = vmul.f32 %v3275_v51, %v3275_v51  ;;  %v421_v62 = vmul.f32 %v3276_v52, %v3276_v52  ;;  %v427_v1 = vmul.f32 %v3274_v50, %v3270_v42 }
  0x24   : > { %256 = vst.msk [vmem:[#allocation2 + $0xf0] sm:$0xff] %vm225_vm1, %v4083_v3  ;;  %257 = vst.msk [vmem:[#allocation2 + $0xf8] sm:$0xff] %vm225_vm1, %v4083_v3  ;;  %v428_v2 = vmul.f32 %v3275_v51, %v3271_v47  ;;  %v429_v4 = vmul.f32 %v3276_v52, %v3272_v48 }
  0x25   : > { %258 = vst.msk [vmem:[#allocation2 + $0x100] sm:$0xff] %vm225_vm1, %v4083_v3  ;;  %259 = vst.msk [vmem:[#allocation2 + $0x108] sm:$0xff] %vm225_vm1, %v4083_v3 }
  0x26   : > { %260 = vst.msk [vmem:[#allocation2 + $0x110] sm:$0xff] %vm225_vm1, %v4083_v3  ;;  %261 = vst.msk [vmem:[#allocation2 + $0x118] sm:$0xff] %vm225_vm1, %v4083_v3 }
  0x27   : > { %262 = vst.msk [vmem:[#allocation2 + $0x120] sm:$0xff] %vm225_vm1, %v4083_v3  ;;  %263 = vst.msk [vmem:[#allocation2 + $0x128] sm:$0xff] %vm225_vm1, %v4083_v3 }
  0x28   : > { %264 = vst.msk [vmem:[#allocation2 + $0x130] sm:$0xff] %vm225_vm1, %v4083_v3  ;;  %265 = vst.msk [vmem:[#allocation2 + $0x138] sm:$0xff] %vm225_vm1, %v4083_v3 }
  0x29   : > { %266 = vst.msk [vmem:[#allocation2 + $0x140] sm:$0xff] %vm225_vm1, %v4083_v3  ;;  %267 = vst.msk [vmem:[#allocation2 + $0x148] sm:$0xff] %vm225_vm1, %v4083_v3 }
  0x2a   : > { %268 = vst.msk [vmem:[#allocation2 + $0x150] sm:$0xff] %vm225_vm1, %v4083_v3  ;;  %269 = vst.msk [vmem:[#allocation2 + $0x158] sm:$0xff] %vm225_vm1, %v4083_v3 }
  0x2b   : > { %270 = vst.msk [vmem:[#allocation2 + $0x160] sm:$0xff] %vm225_vm1, %v4083_v3  ;;  %271 = vst.msk [vmem:[#allocation2 + $0x168] sm:$0xff] %vm225_vm1, %v4083_v3 }
  0x2c   : > { %272 = vst.msk [vmem:[#allocation2 + $0x170] sm:$0xff] %vm225_vm1, %v4083_v3  ;;  %273 = vst.msk [vmem:[#allocation2 + $0x178] sm:$0xff] %vm225_vm1, %v4083_v3 }
  0x2d   : > { %274 = vst.msk [vmem:[#allocation2 + $0x180] sm:$0xff] %vm225_vm1, %v4083_v3  ;;  %275 = vst.msk [vmem:[#allocation2 + $0x188] sm:$0xff] %vm225_vm1, %v4083_v3 }
  0x2e   : > { %276 = vst.msk [vmem:[#allocation2 + $0x190] sm:$0xff] %vm225_vm1, %v4083_v3  ;;  %277 = vst.msk [vmem:[#allocation2 + $0x198] sm:$0xff] %vm225_vm1, %v4083_v3 }
  0x2f   : > { %278 = vst.msk [vmem:[#allocation2 + $0x1a0] sm:$0xff] %vm225_vm1, %v4083_v3  ;;  %279 = vst.msk [vmem:[#allocation2 + $0x1a8] sm:$0xff] %vm225_vm1, %v4083_v3 }
  0x30   : > { %280 = vst.msk [vmem:[#allocation2 + $0x1b0] sm:$0xff] %vm225_vm1, %v4083_v3  ;;  %281 = vst.msk [vmem:[#allocation2 + $0x1b8] sm:$0xff] %vm225_vm1, %v4083_v3 }
  0x31   : > { %282 = vst.msk [vmem:[#allocation2 + $0x1c0] sm:$0xff] %vm225_vm1, %v4083_v3  ;;  %283 = vst.msk [vmem:[#allocation2 + $0x1c8] sm:$0xff] %vm225_vm1, %v4083_v3 }
  0x32   : > { %284 = vst.msk [vmem:[#allocation2 + $0x1d0] sm:$0xff] %vm225_vm1, %v4083_v3  ;;  %285 = vst.msk [vmem:[#allocation2 + $0x1d8] sm:$0xff] %vm225_vm1, %v4083_v3 }
  0x33   : > { %286 = vst.msk [vmem:[#allocation2 + $0x1e0] sm:$0xff] %vm225_vm1, %v4083_v3  ;;  %287 = vst.msk [vmem:[#allocation2 + $0x1e8] sm:$0xff] %vm225_vm1, %v4083_v3 }
  0x34   : > { %288 = vst.msk [vmem:[#allocation2 + $0x1f0] sm:$0xff] %vm225_vm1, %v4083_v3  ;;  %289 = vst.msk [vmem:[#allocation2 + $0x1f8] sm:$0xff] %vm225_vm1, %v4083_v3 }
  0x35   : > { %290 = vst.msk [vmem:[#allocation2 + $0x200] sm:$0xff] %vm225_vm1, %v4083_v3  ;;  %291 = vst.msk [vmem:[#allocation2 + $0x208] sm:$0xff] %vm225_vm1, %v4083_v3 }
  0x36   : > { %292 = vst.msk [vmem:[#allocation2 + $0x210] sm:$0xff] %vm225_vm1, %v4083_v3  ;;  %293 = vst.msk [vmem:[#allocation2 + $0x218] sm:$0xff] %vm225_vm1, %v4083_v3 }
  0x37   : > { %294 = vst.msk [vmem:[#allocation2 + $0x220] sm:$0xff] %vm225_vm1, %v4083_v3  ;;  %295 = vst.msk [vmem:[#allocation2 + $0x228] sm:$0xff] %vm225_vm1, %v4083_v3 }
  0x38   : > { %296 = vst.msk [vmem:[#allocation2 + $0x230] sm:$0xff] %vm225_vm1, %v4083_v3  ;;  %297 = vst.msk [vmem:[#allocation2 + $0x238] sm:$0xff] %vm225_vm1, %v4083_v3 }
  0x39   : > { %298 = vst.msk [vmem:[#allocation2 + $0x240] sm:$0xff] %vm225_vm1, %v4083_v3  ;;  %299 = vst.msk [vmem:[#allocation2 + $0x248] sm:$0xff] %vm225_vm1, %v4083_v3 }
  0x3a   : > { %300 = vst.msk [vmem:[#allocation2 + $0x250] sm:$0xff] %vm225_vm1, %v4083_v3  ;;  %301 = vst.msk [vmem:[#allocation2 + $0x258] sm:$0xff] %vm225_vm1, %v4083_v3 }
  0x3b   : > { %302 = vst.msk [vmem:[#allocation2 + $0x260] sm:$0xff] %vm225_vm1, %v4083_v3  ;;  %303 = vst.msk [vmem:[#allocation2 + $0x268] sm:$0xff] %vm225_vm1, %v4083_v3 }
  0x3c   : > { %304 = vst.msk [vmem:[#allocation2 + $0x270] sm:$0xff] %vm225_vm1, %v4083_v3  ;;  %305 = vst.msk [vmem:[#allocation2 + $0x278] sm:$0xff] %vm225_vm1, %v4083_v3 }
  0x3d   : > { %317 = vst.msk [vmem:[#allocation2] sm:$0xff] %vm225_vm1, %v309_v5  ;;  %318 = vst.msk [vmem:[#allocation2 + $0x8] sm:$0xff] %vm225_vm1, %v310_v7 }
  0x3e   : > { %322 = vst.msk [vmem:[#allocation2 + $0x20] sm:$0xff] %vm225_vm1, %v313_v6  ;;  %319 = vst.msk [vmem:[#allocation2 + $0x10] sm:$0xff] %vm225_vm1, %v311_v10 }
  0x3f   : > { %321 = vst.msk [vmem:[#allocation2 + $0x18] sm:$0x3] %vm320_vm2, %v312_v11  ;;  %325 = vst.msk [vmem:[#allocation2 + $0x38] sm:$0x3] %vm320_vm2, %v316_v16  ;;  %v3278_v16 = vld [vmem:[%s4352_s14 + $0x68] sm:$0xff] }
  0x40   : > { %323 = vst.msk [vmem:[#allocation2 + $0x28] sm:$0xff] %vm225_vm1, %v314_v12  ;;  %330 = vst.msk [vmem:[#allocation2 + $0x40] sm:$0xff] %vm225_vm1, %v326_v8 }
  0x41   : > { %346 = vst.msk [vmem:[#allocation2 + $0x80] sm:$0xff] %vm225_vm1, %v342_v9  ;;  %324 = vst.msk [vmem:[#allocation2 + $0x30] sm:$0xff] %vm225_vm1, %v315_v15  ;;  %v3277_v15 = vld [vmem:[%s4352_s14 + $0x60] sm:$0xff] }
  0x42   : > { %331 = vst.msk [vmem:[#allocation2 + $0x48] sm:$0xff] %vm225_vm1, %v327_v13  ;;  %338 = vst.msk [vmem:[#allocation2 + $0x60] sm:$0xff] %vm225_vm1, %v334_v14 }
  0x43   : > { %360 = vst.msk [vmem:[#allocation2 + $0xa0] sm:$0xff] %vm225_vm1, %v3261_v21  ;;  %332 = vst.msk [vmem:[#allocation2 + $0x50] sm:$0xff] %vm225_vm1, %v328_v17  ;;  %v3279_v17 = vld [vmem:[%s4352_s14 + $0x70] sm:$0xff]  ;;  %v452_v21 = vmul.f32 %v3277_v15, %v3277_v15 }
  0x44   : > { %333 = vst.msk [vmem:[#allocation2 + $0x58] sm:$0x3] %vm320_vm2, %v329_v18  ;;  %363 = vst.msk [vmem:[#allocation2 + $0xb8] sm:$0x3] %vm320_vm2, %v3264_v28  ;;  %v476_v57 = vld [vmem:[#allocation2] sm:$0xff]  ;;  %v477_v58 = vld [vmem:[#allocation2 + $0x8] sm:$0xff] }
  0x45   : > { %339 = vst.msk [vmem:[#allocation2 + $0x68] sm:$0xff] %vm225_vm1, %v335_v19  ;;  %347 = vst.msk [vmem:[#allocation2 + $0x88] sm:$0xff] %vm225_vm1, %v343_v20  ;;  %3623 = vmatprep.mubr.msk.f32.mxu0 %vm225_vm1, %v476_v57  ;;  %v478_v63 = vld [vmem:[#allocation2 + $0x10] sm:$0xff]  ;;  %v480_v6 = vld [vmem:[#allocation2 + $0x20] sm:$0xff] }
  0x46   : > { %361 = vst.msk [vmem:[#allocation2 + $0xa8] sm:$0xff] %vm225_vm1, %v3262_v26  ;;  %362 = vst.msk [vmem:[#allocation2 + $0xb0] sm:$0xff] %vm225_vm1, %v3263_v27  ;;  %3624 = vmatmul.mubr.msk.f32.vlgmr.msra.gmra.mxu0 %vm225_vm1, %v477_v58  ;;  %v479_v5 = vld [vmem:[#allocation2 + $0x18] sm:$0xff]  ;;  %v3281_v19 = vld [vmem:[%s4357_s23 + $0x60] sm:$0xff] }
  0x47   : > { %340 = vst.msk [vmem:[#allocation2 + $0x70] sm:$0xff] %vm225_vm1, %v336_v22  ;;  %348 = vst.msk [vmem:[#allocation2 + $0x90] sm:$0xff] %vm225_vm1, %v344_v24  ;;  %3626 = vmatprep.mubr.msk.f32.mxu0 %vm225_vm1, %v478_v63  ;;  %v481_v7 = vld [vmem:[#allocation2 + $0x28] sm:$0xff]  ;;  %v483_v9 = vld [vmem:[#allocation2 + $0x38] sm:$0xff]  ;;  %v453_v22 = vmul.f32 %v3278_v16, %v3278_v16  ;;  %v460_v27 = vmul.f32 %v3281_v19, %v3281_v19 }
  0x48   : > { %341 = vst.msk [vmem:[#allocation2 + $0x78] sm:$0x3] %vm320_vm2, %v337_v23  ;;  %349 = vst.msk [vmem:[#allocation2 + $0x98] sm:$0x3] %vm320_vm2, %v345_v25  ;;  %v482_v8 = vld [vmem:[#allocation2 + $0x30] sm:$0xff]  ;;  %v484_v10 = vld [vmem:[#allocation2 + $0x40] sm:$0xff]  ;;  %v454_v23 = vmul.f32 %v3279_v17, %v3279_v17 }
  0x49   : > { %364 = vst.msk [vmem:[#allocation2 + $0xc0] sm:$0xff] %vm225_vm1, %v3265_v29  ;;  %365 = vst.msk [vmem:[#allocation2 + $0xc8] sm:$0xff] %vm225_vm1, %v3266_v30  ;;  %v485_v11 = vld [vmem:[#allocation2 + $0x48] sm:$0xff]  ;;  %v488_v14 = vld [vmem:[#allocation2 + $0x60] sm:$0xff]  ;;  %v468_v29 = vmul.f32 %v3281_v19, %v3277_v15 }
  0x4a   : > { %366 = vst.msk [vmem:[#allocation2 + $0xd0] sm:$0xff] %vm225_vm1, %v3267_v31  ;;  %372 = vst.msk [vmem:[#allocation2 + $0xe0] sm:$0xff] %vm225_vm1, %v368_v32  ;;  %3627 = vmatmul.mubr.msk.f32.gmra.mxu0 %vm225_vm1, %v479_v5  ;;  %v486_v12 = vld [vmem:[#allocation2 + $0x50] sm:$0xff]  ;;  %v3280_v18 = vld [vmem:[%s4352_s14 + $0x78] sm:$0x3]  ;;  %s4021_s14 = scalar_lea.vmem %s4737_s7, 16 }
  0x4b   : > { %367 = vst.msk [vmem:[#allocation2 + $0xd8] sm:$0x3] %vm320_vm2, %v3268_v36  ;;  %375 = vst.msk [vmem:[#allocation2 + $0xf8] sm:$0x3] %vm320_vm2, %v371_v35  ;;  %3629 = vmatprep.mubr.msk.f32.mxu0 %vm225_vm1, %v480_v6  ;;  %v487_v13 = vld [vmem:[#allocation2 + $0x58] sm:$0xff]  ;;  %v3282_v20 = vld [vmem:[%s4357_s23 + $0x68] sm:$0xff]  ;;  %v455_v26 = vmul.f32 %v3280_v18, %v3280_v18  ;;  %p4022_p11 = scmp.ne.s32.totalorder %s4737_s7, %s4021_s14  ;;  %p4029_p1 = scmp.lt.s32.totalorder %s4027_s22, %s4021_s14 }
  0x4c   : > { %373 = vst.msk [vmem:[#allocation2 + $0xe8] sm:$0xff] %vm225_vm1, %v369_v33  ;;  %374 = vst.msk [vmem:[#allocation2 + $0xf0] sm:$0xff] %vm225_vm1, %v370_v34  ;;  %v3283_v24 = vld [vmem:[%s4357_s23 + $0x70] sm:$0xff]  ;;  %v3284_v25 = vld [vmem:[%s4357_s23 + $0x78] sm:$0x3]  ;;  %v461_v28 = vmul.f32 %v3282_v20, %v3282_v20  ;;  %v469_v33 = vmul.f32 %v3282_v20, %v3278_v16 }
  0x4d   : > { %402 = vst.msk [vmem:[#allocation2 + $0x140] sm:$0xff] %vm225_vm1, %v3269_v41  ;;  %403 = vst.msk [vmem:[#allocation2 + $0x148] sm:$0xff] %vm225_vm1, %v3270_v42  ;;  %v489_v30 = vld [vmem:[#allocation2 + $0x68] sm:$0xff]  ;;  %v462_v31 = vmul.f32 %v3283_v24, %v3283_v24  ;;  %v463_v32 = vmul.f32 %v3284_v25, %v3284_v25  ;;  %v470_v34 = vmul.f32 %v3283_v24, %v3279_v17  ;;  %v496_v42 = vld [vmem:[#allocation2 + $0xa0] sm:$0xff]  ;;  %p4023_p12 = pnand %p4022_p11, %p4148_p5  ;;  %p4030_p2 = por %p4029_p1, %p4028_p0 }
  0x4e   : > { %380 = vst.msk [vmem:[#allocation2 + $0x100] sm:$0xff] %vm225_vm1, %v376_v37  ;;  %381 = vst.msk [vmem:[#allocation2 + $0x108] sm:$0xff] %vm225_vm1, %v377_v38  ;;  %3630 = vmatmul.mubr.msk.f32.gmra.mxu0 %vm225_vm1, %v481_v7  ;;  %v490_v35 = vld [vmem:[#allocation2 + $0x70] sm:$0xff]  ;;  %v471_v36 = vmul.f32 %v3284_v25, %v3280_v18  ;;  %v492_v38 = vld [vmem:[#allocation2 + $0x80] sm:$0xff] }
  0x4f   : > { %382 = vst.msk [vmem:[#allocation2 + $0x110] sm:$0xff] %vm225_vm1, %v378_v39  ;;  %388 = vst.msk [vmem:[#allocation2 + $0x120] sm:$0xff] %vm225_vm1, %v384_v40  ;;  %3632 = vmatprep.mubr.msk.f32.mxu0 %vm225_vm1, %v482_v8  ;;  %v491_v37 = vld [vmem:[#allocation2 + $0x78] sm:$0xff]  ;;  %v493_v39 = vld [vmem:[#allocation2 + $0x88] sm:$0xff]  ;;  %p4024_p13 = pneg %p4023_p12 }
  0x50   : > { %404 = vst.msk [vmem:[#allocation2 + $0x150] sm:$0xff] %vm225_vm1, %v3271_v47  ;;  %406 = vst.msk [vmem:[#allocation2 + $0x160] sm:$0xff] %vm225_vm1, %v3273_v49  ;;  %v494_v40 = vld [vmem:[#allocation2 + $0x90] sm:$0xff]  ;;  %v495_v41 = vld [vmem:[#allocation2 + $0x98] sm:$0xff] }
  0x51   : > { %405 = vst.msk [vmem:[#allocation2 + $0x158] sm:$0x3] %vm320_vm2, %v3272_v48  ;;  %383 = vst.msk [vmem:[#allocation2 + $0x118] sm:$0x3] %vm320_vm2, %v379_v43  ;;  %v497_v43 = vld [vmem:[#allocation2 + $0xa8] sm:$0xff]  ;;  %v502_v47 = vld [vmem:[#allocation2 + $0xd0] sm:$0xff]  ;;  %p4031_p3 = pnand %p4030_p2, %p4024_p13 }
  0x52   : > { %389 = vst.msk [vmem:[#allocation2 + $0x128] sm:$0xff] %vm225_vm1, %v385_v44  ;;  %390 = vst.msk [vmem:[#allocation2 + $0x130] sm:$0xff] %vm225_vm1, %v386_v45  ;;  %3633 = vmatmul.mubr.msk.f32.gmra.mxu0 %vm225_vm1, %v483_v9  ;;  %v498_v44 = vld [vmem:[#allocation2 + $0xb0] sm:$0xff]  ;;  %v499_v45 = vld [vmem:[#allocation2 + $0xb8] sm:$0xff] }
  0x53   : > { %391 = vst.msk [vmem:[#allocation2 + $0x138] sm:$0x3] %vm320_vm2, %v387_v46  ;;  %409 = vst.msk [vmem:[#allocation2 + $0x178] sm:$0x3] %vm320_vm2, %v3276_v52  ;;  %3635 = vmatprep.mubr.msk.f32.mxu0 %vm225_vm1, %v484_v10  ;;  %v500_v46 = vld [vmem:[#allocation2 + $0xc0] sm:$0xff]  ;;  %v503_v48 = vld [vmem:[#allocation2 + $0xd8] sm:$0xff] }
  0x54   : > { %407 = vst.msk [vmem:[#allocation2 + $0x168] sm:$0xff] %vm225_vm1, %v3274_v50  ;;  %408 = vst.msk [vmem:[#allocation2 + $0x170] sm:$0xff] %vm225_vm1, %v3275_v51  ;;  %v504_v49 = vld [vmem:[#allocation2 + $0xe0] sm:$0xff]  ;;  %v505_v50 = vld [vmem:[#allocation2 + $0xe8] sm:$0xff] }
  0x55   : > { %414 = vst.msk [vmem:[#allocation2 + $0x180] sm:$0xff] %vm225_vm1, %v410_v53  ;;  %415 = vst.msk [vmem:[#allocation2 + $0x188] sm:$0xff] %vm225_vm1, %v411_v54  ;;  %v506_v51 = vld [vmem:[#allocation2 + $0xf0] sm:$0xff]  ;;  %v507_v52 = vld [vmem:[#allocation2 + $0xf8] sm:$0xff] }
  0x56   : > { %416 = vst.msk [vmem:[#allocation2 + $0x190] sm:$0xff] %vm225_vm1, %v412_v55  ;;  %422 = vst.msk [vmem:[#allocation2 + $0x1a0] sm:$0xff] %vm225_vm1, %v418_v59  ;;  %3636 = vmatmul.mubr.msk.f32.gmra.mxu0 %vm225_vm1, %v485_v11  ;;  %v508_v53 = vld [vmem:[#allocation2 + $0x100] sm:$0xff]  ;;  %v509_v54 = vld [vmem:[#allocation2 + $0x108] sm:$0xff] }
  0x57   : > { %417 = vst.msk [vmem:[#allocation2 + $0x198] sm:$0x3] %vm320_vm2, %v413_v56  ;;  %425 = vst.msk [vmem:[#allocation2 + $0x1b8] sm:$0x3] %vm320_vm2, %v421_v62  ;;  %3638 = vmatprep.mubr.msk.f32.mxu0 %vm225_vm1, %v486_v12  ;;  %v510_v55 = vld [vmem:[#allocation2 + $0x110] sm:$0xff]  ;;  %v512_v57 = vld [vmem:[#allocation2 + $0x120] sm:$0xff] }
  0x58   : > { %423 = vst.msk [vmem:[#allocation2 + $0x1a8] sm:$0xff] %vm225_vm1, %v419_v60  ;;  %424 = vst.msk [vmem:[#allocation2 + $0x1b0] sm:$0xff] %vm225_vm1, %v420_v61  ;;  %v511_v56 = vld [vmem:[#allocation2 + $0x118] sm:$0xff]  ;;  %v516_v61 = vld [vmem:[#allocation2 + $0x140] sm:$0xff] }
  0x59   : > { %430 = vst.msk [vmem:[#allocation2 + $0x1c0] sm:$0xff] %vm225_vm1, %v426_v0  ;;  %431 = vst.msk [vmem:[#allocation2 + $0x1c8] sm:$0xff] %vm225_vm1, %v427_v1  ;;  %v513_v58 = vld [vmem:[#allocation2 + $0x128] sm:$0xff]  ;;  %v514_v59 = vld [vmem:[#allocation2 + $0x130] sm:$0xff] }
  0x5a   : > { %432 = vst.msk [vmem:[#allocation2 + $0x1d0] sm:$0xff] %vm225_vm1, %v428_v2  ;;  %444 = vst.msk [vmem:[#allocation2 + $0x1e0] sm:$0xff] %vm225_vm1, %v3277_v15  ;;  %3639 = vmatmul.mubr.msk.f32.gmra.mxu0 %vm225_vm1, %v487_v13  ;;  %v515_v60 = vld [vmem:[#allocation2 + $0x138] sm:$0xff]  ;;  %v517_v62 = vld [vmem:[#allocation2 + $0x148] sm:$0xff] }
  0x5b   : > { %433 = vst.msk [vmem:[#allocation2 + $0x1d8] sm:$0x3] %vm320_vm2, %v429_v4  ;;  %447 = vst.msk [vmem:[#allocation2 + $0x1f8] sm:$0x3] %vm320_vm2, %v3280_v18  ;;  %3641 = vmatprep.mubr.msk.f32.mxu0 %vm225_vm1, %v488_v14  ;;  %v518_v63 = vld [vmem:[#allocation2 + $0x150] sm:$0xff]  ;;  %v519_v0 = vld [vmem:[#allocation2 + $0x158] sm:$0xff] }
  0x5c   : > { %445 = vst.msk [vmem:[#allocation2 + $0x1e8] sm:$0xff] %vm225_vm1, %v3278_v16  ;;  %446 = vst.msk [vmem:[#allocation2 + $0x1f0] sm:$0xff] %vm225_vm1, %v3279_v17  ;;  %v520_v1 = vld [vmem:[#allocation2 + $0x160] sm:$0xff]  ;;  %v521_v4 = vld [vmem:[#allocation2 + $0x168] sm:$0xff] }
  0x5d   : > { %448 = vst.msk [vmem:[#allocation2 + $0x200] sm:$0xff] %vm225_vm1, %v3281_v19  ;;  %449 = vst.msk [vmem:[#allocation2 + $0x208] sm:$0xff] %vm225_vm1, %v3282_v20  ;;  %v4521_v2 = vld [vmem:[%s4777_s2] sm:$0xff]  ;;  %v522_v5 = vld [vmem:[#allocation2 + $0x170] sm:$0xff] }
  0x5e   : > { %450 = vst.msk [vmem:[#allocation2 + $0x210] sm:$0xff] %vm225_vm1, %v3283_v24  ;;  %456 = vst.msk [vmem:[#allocation2 + $0x220] sm:$0xff] %vm225_vm1, %v452_v21  ;;  %3642 = vmatmul.mubr.msk.f32.gmra.mxu0 %vm225_vm1, %v489_v30  ;;  %3751 = vmatprep.mubr.msk.f32.mxu1 %vm1355_vm4, %v4521_v2  ;;  %v523_v6 = vld [vmem:[#allocation2 + $0x178] sm:$0xff]  ;;  %v524_v7 = vld [vmem:[#allocation2 + $0x180] sm:$0xff] }
  0x5f   : > { %451 = vst.msk [vmem:[#allocation2 + $0x218] sm:$0x3] %vm320_vm2, %v3284_v25  ;;  %459 = vst.msk [vmem:[#allocation2 + $0x238] sm:$0x3] %vm320_vm2, %v455_v26  ;;  %3644 = vmatprep.mubr.msk.f32.mxu0 %vm225_vm1, %v490_v35  ;;  %v525_v8 = vld [vmem:[#allocation2 + $0x188] sm:$0xff]  ;;  %v526_v9 = vld [vmem:[#allocation2 + $0x190] sm:$0xff] }
  0x60   : > { %457 = vst.msk [vmem:[#allocation2 + $0x228] sm:$0xff] %vm225_vm1, %v453_v22  ;;  %458 = vst.msk [vmem:[#allocation2 + $0x230] sm:$0xff] %vm225_vm1, %v454_v23  ;;  %v527_v10 = vld [vmem:[#allocation2 + $0x198] sm:$0xff]  ;;  %v528_v11 = vld [vmem:[#allocation2 + $0x1a0] sm:$0xff] }
  0x61   : > { %464 = vst.msk [vmem:[#allocation2 + $0x240] sm:$0xff] %vm225_vm1, %v460_v27  ;;  %465 = vst.msk [vmem:[#allocation2 + $0x248] sm:$0xff] %vm225_vm1, %v461_v28  ;;  %v529_v12 = vld [vmem:[#allocation2 + $0x1a8] sm:$0xff]  ;;  %v530_v13 = vld [vmem:[#allocation2 + $0x1b0] sm:$0xff] }
  0x62   : > { %472 = vst.msk [vmem:[#allocation2 + $0x260] sm:$0xff] %vm225_vm1, %v468_v29  ;;  %466 = vst.msk [vmem:[#allocation2 + $0x250] sm:$0xff] %vm225_vm1, %v462_v31  ;;  %3645 = vmatmul.mubr.msk.f32.gmra.mxu0 %vm225_vm1, %v491_v37  ;;  %v531_v14 = vld [vmem:[#allocation2 + $0x1b8] sm:$0xff]  ;;  %v532_v15 = vld [vmem:[#allocation2 + $0x1c0] sm:$0xff] }
  0x63   : > { %467 = vst.msk [vmem:[#allocation2 + $0x258] sm:$0x3] %vm320_vm2, %v463_v32  ;;  %475 = vst.msk [vmem:[#allocation2 + $0x278] sm:$0x3] %vm320_vm2, %v471_v36  ;;  %3647 = vmatprep.mubr.msk.f32.mxu0 %vm225_vm1, %v492_v38  ;;  %v533_v16 = vld [vmem:[#allocation2 + $0x1c8] sm:$0xff]  ;;  %v534_v17 = vld [vmem:[#allocation2 + $0x1d0] sm:$0xff] }
  0x64   : > { %473 = vst.msk [vmem:[#allocation2 + $0x268] sm:$0xff] %vm225_vm1, %v469_v33  ;;  %474 = vst.msk [vmem:[#allocation2 + $0x270] sm:$0xff] %vm225_vm1, %v470_v34  ;;  %v535_v18 = vld [vmem:[#allocation2 + $0x1d8] sm:$0xff]  ;;  %v536_v19 = vld [vmem:[#allocation2 + $0x1e0] sm:$0xff] }
  0x65   : > { %307 = vst.msk [vmem:[#allocation4] sm:$0xff] %vm306_vm3, %v4083_v3  ;;  %308 = vst.msk [vmem:[#allocation4 + $0x8] sm:$0xff] %vm306_vm3, %v4083_v3  ;;  %v501_v3 = vld [vmem:[#allocation2 + $0xc8] sm:$0xff]  ;;  %v538_v21 = vld [vmem:[#allocation2 + $0x1f0] sm:$0xff] }
  0x66   : > { %3648 = vmatmul.mubr.msk.f32.gmra.mxu0 %vm225_vm1, %v493_v39  ;;  %v537_v20 = vld [vmem:[#allocation2 + $0x1e8] sm:$0xff]  ;;  %v539_v22 = vld [vmem:[#allocation2 + $0x1f8] sm:$0xff]  ;;  %v540_v23 = vld [vmem:[#allocation2 + $0x200] sm:$0xff] }
  0x67   : > { %3650 = vmatprep.mubr.msk.f32.mxu0 %vm225_vm1, %v494_v40  ;;  %v541_v24 = vld [vmem:[#allocation2 + $0x208] sm:$0xff]  ;;  %v542_v25 = vld [vmem:[#allocation2 + $0x210] sm:$0xff]  ;;  %v543_v26 = vld [vmem:[#allocation2 + $0x218] sm:$0xff] }
  0x68   : > { %v544_v27 = vld [vmem:[#allocation2 + $0x220] sm:$0xff]  ;;  %v545_v28 = vld [vmem:[#allocation2 + $0x228] sm:$0xff]  ;;  %v546_v29 = vld [vmem:[#allocation2 + $0x230] sm:$0xff] }
  0x69   : > { %v547_v30 = vld [vmem:[#allocation2 + $0x238] sm:$0xff]  ;;  %v548_v31 = vld [vmem:[#allocation2 + $0x240] sm:$0xff]  ;;  %v549_v32 = vld [vmem:[#allocation2 + $0x248] sm:$0xff] }
  0x6a   : > { %3651 = vmatmul.mubr.msk.f32.gmra.mxu0 %vm225_vm1, %v495_v41  ;;  %v550_v33 = vld [vmem:[#allocation2 + $0x250] sm:$0xff]  ;;  %v551_v34 = vld [vmem:[#allocation2 + $0x258] sm:$0xff]  ;;  %v552_v35 = vld [vmem:[#allocation2 + $0x260] sm:$0xff] }
  0x6b   : > { %3653 = vmatprep.mubr.msk.f32.mxu0 %vm225_vm1, %v496_v42  ;;  %v553_v36 = vld [vmem:[#allocation2 + $0x268] sm:$0xff]  ;;  %v554_v37 = vld [vmem:[#allocation2 + $0x270] sm:$0xff]  ;;  %v555_v38 = vld [vmem:[#allocation2 + $0x278] sm:$0xff] }
  0x6e   : > { %3654 = vmatmul.mubr.msk.f32.gmra.mxu0 %vm225_vm1, %v497_v43 }
  0x6f   : > { %3656 = vmatprep.mubr.msk.f32.mxu0 %vm225_vm1, %v498_v44 }
  0x72   : > { %3657 = vmatmul.mubr.msk.f32.gmra.mxu0 %vm225_vm1, %v499_v45 }
  0x73   : > { %3659 = vmatprep.mubr.msk.f32.mxu0 %vm225_vm1, %v500_v46 }
  0x76   : > { %3660 = vmatmul.mubr.msk.f32.gmra.mxu0 %vm225_vm1, %v501_v3 }
  0x77   : > { %3662 = vmatprep.mubr.msk.f32.mxu0 %vm225_vm1, %v502_v47 }
  0x7a   : > { %3663 = vmatmul.mubr.msk.f32.gmra.mxu0 %vm225_vm1, %v503_v48 }
  0x7b   : > { %3665 = vmatprep.mubr.msk.f32.mxu0 %vm225_vm1, %v504_v49 }
  0x7e   : > { %3666 = vmatmul.mubr.msk.f32.gmra.mxu0 %vm225_vm1, %v505_v50 }
  0x7f   : > { %3668 = vmatprep.mubr.msk.f32.mxu0 %vm225_vm1, %v506_v51 }
  0x82   : > { %3669 = vmatmul.mubr.msk.f32.gmra.mxu0 %vm225_vm1, %v507_v52  ;;  %v4574_v52 = vld [vmem:[%s4777_s2 + $0x8] sm:$0xff] }
  0x83   : > { %3671 = vmatprep.mubr.msk.f32.mxu0 %vm225_vm1, %v508_v53 }
  0x86   : > { %3672 = vmatmul.mubr.msk.f32.gmra.mxu0 %vm225_vm1, %v509_v54 }
  0x87   : > { %3674 = vmatprep.mubr.msk.f32.mxu0 %vm225_vm1, %v510_v55 }
  0x8a   : > { %3675 = vmatmul.mubr.msk.f32.gmra.mxu0 %vm225_vm1, %v511_v56 }
  0x8b   : > { %3677 = vmatprep.mubr.msk.f32.mxu0 %vm225_vm1, %v512_v57 }
  0x8e   : > { %3678 = vmatmul.mubr.msk.f32.gmra.mxu0 %vm225_vm1, %v513_v58 }
  0x8f   : > { %3680 = vmatprep.mubr.msk.f32.mxu0 %vm225_vm1, %v514_v59 }
  0x92   : > { %3681 = vmatmul.mubr.msk.f32.gmra.mxu0 %vm225_vm1, %v515_v60 }
  0x93   : > { %3683 = vmatprep.mubr.msk.f32.mxu0 %vm225_vm1, %v516_v61 }
  0x96   : > { %3684 = vmatmul.mubr.msk.f32.gmra.mxu0 %vm225_vm1, %v517_v62 }
  0x97   : > { %3686 = vmatprep.mubr.msk.f32.mxu0 %vm225_vm1, %v518_v63 }
  0x9a   : > { %3687 = vmatmul.mubr.msk.f32.gmra.mxu0 %vm225_vm1, %v519_v0 }
  0x9b   : > { %3689 = vmatprep.mubr.msk.f32.mxu0 %vm225_vm1, %v520_v1 }
  0x9e   : > { %3690 = vmatmul.mubr.msk.f32.gmra.mxu0 %vm225_vm1, %v521_v4 }
  0x9f   : > { %3692 = vmatprep.mubr.msk.f32.mxu0 %vm225_vm1, %v522_v5 }
  0xa2   : > { %3693 = vmatmul.mubr.msk.f32.gmra.mxu0 %vm225_vm1, %v523_v6 }
  0xa3   : > { %3695 = vmatprep.mubr.msk.f32.mxu0 %vm225_vm1, %v524_v7 }
  0xa6   : > { %3696 = vmatmul.mubr.msk.f32.gmra.mxu0 %vm225_vm1, %v525_v8 }
  0xa7   : > { %3698 = vmatprep.mubr.msk.f32.mxu0 %vm225_vm1, %v526_v9 }
  0xaa   : > { %3699 = vmatmul.mubr.msk.f32.gmra.mxu0 %vm225_vm1, %v527_v10 }
  0xab   : > { %3701 = vmatprep.mubr.msk.f32.mxu0 %vm225_vm1, %v528_v11 }
  0xae   : > { %3702 = vmatmul.mubr.msk.f32.gmra.mxu0 %vm225_vm1, %v529_v12 }
  0xaf   : > { %3704 = vmatprep.mubr.msk.f32.mxu0 %vm225_vm1, %v530_v13 }
  0xb2   : > { %3705 = vmatmul.mubr.msk.f32.gmra.mxu0 %vm225_vm1, %v531_v14 }
  0xb3   : > { %3707 = vmatprep.mubr.msk.f32.mxu0 %vm225_vm1, %v532_v15 }
  0xb6   : > { %3708 = vmatmul.mubr.msk.f32.gmra.mxu0 %vm225_vm1, %v533_v16 }
  0xb7   : > { %3710 = vmatprep.mubr.msk.f32.mxu0 %vm225_vm1, %v534_v17 }
  0xba   : > { %3711 = vmatmul.mubr.msk.f32.gmra.mxu0 %vm225_vm1, %v535_v18 }
  0xbb   : > { %3713 = vmatprep.mubr.msk.f32.mxu0 %vm225_vm1, %v536_v19 }
  0xbe   : > { %3714 = vmatmul.mubr.msk.f32.gmra.mxu0 %vm225_vm1, %v537_v20 }
  0xbf   : > { %3716 = vmatprep.mubr.msk.f32.mxu0 %vm225_vm1, %v538_v21 }
  0xc2   : > { %3717 = vmatmul.mubr.msk.f32.gmra.mxu0 %vm225_vm1, %v539_v22 }
  0xc3   : > { %3719 = vmatprep.mubr.msk.f32.mxu0 %vm225_vm1, %v540_v23 }
  0xc6   : > { %3720 = vmatmul.mubr.msk.f32.gmra.mxu0 %vm225_vm1, %v541_v24 }
  0xc7   : > { %3722 = vmatprep.mubr.msk.f32.mxu0 %vm225_vm1, %v542_v25 }
  0xca   : > { %3723 = vmatmul.mubr.msk.f32.gmra.mxu0 %vm225_vm1, %v543_v26 }
  0xcb   : > { %3725 = vmatprep.mubr.msk.f32.mxu0 %vm225_vm1, %v544_v27 }
  0xce   : > { %3726 = vmatmul.mubr.msk.f32.gmra.mxu0 %vm225_vm1, %v545_v28 }
  0xcf   : > { %3728 = vmatprep.mubr.msk.f32.mxu0 %vm225_vm1, %v546_v29 }
  0xd2   : > { %3729 = vmatmul.mubr.msk.f32.gmra.mxu0 %vm225_vm1, %v547_v30 }
  0xd3   : > { %3731 = vmatprep.mubr.msk.f32.mxu0 %vm225_vm1, %v548_v31 }
  0xd6   : > { %3732 = vmatmul.mubr.msk.f32.gmra.mxu0 %vm225_vm1, %v549_v32 }
  0xd7   : > { %3734 = vmatprep.mubr.msk.f32.mxu0 %vm225_vm1, %v550_v33 }
  0xda   : > { %3735 = vmatmul.mubr.msk.f32.gmra.mxu0 %vm225_vm1, %v551_v34 }
  0xdb   : > { %3737 = vmatprep.mubr.msk.f32.mxu0 %vm225_vm1, %v552_v35 }
  0xde   : > { %3738 = vmatmul.mubr.msk.f32.gmra.mxu0 %vm225_vm1, %v553_v36 }
  0xdf   : > { %3740 = vmatprep.mubr.msk.f32.mxu0 %vm225_vm1, %v554_v37 }
  0xe2   : > { %3741 = vmatmul.mubr.msk.f32.gmra.mxu0 %vm225_vm1, %v555_v38 }
 0x106   : > { %v3625_v39 = vpop.f32.mrf.mxu0 }
 0x107   : > { %1270 = vst.msk [vmem:[#allocation3 + $0x8] sm:$0xff] %vm306_vm3, %v3625_v39 }
 0x108   : > { %v870_v40 = vpop.f32.mrf.mxu0 }
 0x109   : > { %1269 = vst.msk [vmem:[#allocation3] sm:$0xff] %vm306_vm3, %v870_v40 }
 0x10a   : > { %v3628_v41 = vpop.f32.mrf.mxu0 }
 0x10b   : > { %1272 = vst.msk [vmem:[#allocation3 + $0x18] sm:$0xff] %vm306_vm3, %v3628_v41 }
 0x10c   : > { %v880_v42 = vpop.f32.mrf.mxu0 }
 0x10d   : > { %1271 = vst.msk [vmem:[#allocation3 + $0x10] sm:$0xff] %vm306_vm3, %v880_v42 }
 0x10e   : > { %v3631_v43 = vpop.f32.mrf.mxu0  ;;  %v1352_v49 = vld [vmem:[#allocation3 + $0x8] sm:$0xff] }
 0x10f   : > { %1274 = vst.msk [vmem:[#allocation3 + $0x28] sm:$0xff] %vm306_vm3, %v3631_v43 }
 0x110   : > { %v890_v44 = vpop.f32.mrf.mxu0  ;;  %v1351_v51 = vld [vmem:[#allocation3] sm:$0xff] }
 0x111   : > { %1273 = vst.msk [vmem:[#allocation3 + $0x20] sm:$0xff] %vm306_vm3, %v890_v44 }
 0x112   : > { %v3634_v45 = vpop.f32.mrf.mxu0  ;;  %v1354_v46 = vld [vmem:[#allocation3 + $0x18] sm:$0xff] }
 0x113   : > { %1276 = vst.msk [vmem:[#allocation3 + $0x38] sm:$0xff] %vm306_vm3, %v3634_v45  ;;  %3743 = vmatprep.subr.mxu1 %v1354_v46 }
 0x114   : > { %v900_v3 = vpop.f32.mrf.mxu0  ;;  %3744 = vmatpush3.msra.mxu1 %v1354_v46  ;;  %v1353_v47 = vld [vmem:[#allocation3 + $0x10] sm:$0xff] }
 0x115   : > { %1275 = vst.msk [vmem:[#allocation3 + $0x30] sm:$0xff] %vm306_vm3, %v900_v3  ;;  %3745 = vmatprep.subr.mxu1 %v1353_v47 }
 0x116   : > { %v3637_v48 = vpop.f32.mrf.mxu0  ;;  %3746 = vmatpush3.msra.mxu1 %v1353_v47  ;;  %v1438_v58 = vld [vmem:[#allocation3 + $0x28] sm:$0xff] }
 0x117   : > { %1278 = vst.msk [vmem:[#allocation3 + $0x48] sm:$0xff] %vm306_vm3, %v3637_v48  ;;  %3747 = vmatprep.subr.mxu1 %v1352_v49 }
 0x118   : > { %v910_v50 = vpop.f32.mrf.mxu0  ;;  %3748 = vmatpush3.msra.mxu1 %v1352_v49  ;;  %v1437_v60 = vld [vmem:[#allocation3 + $0x20] sm:$0xff] }
 0x119   : > { %1277 = vst.msk [vmem:[#allocation3 + $0x40] sm:$0xff] %vm306_vm3, %v910_v50  ;;  %3749 = vmatprep.subr.mxu1 %v1351_v51 }
 0x11a   : > { %v3640_v53 = vpop.f32.mrf.mxu0  ;;  %3750 = vmatpush3.msra.mxu1 %v1351_v51  ;;  %v1440_v54 = vld [vmem:[#allocation3 + $0x38] sm:$0xff] }
 0x11b   : > { %1280 = vst.msk [vmem:[#allocation3 + $0x58] sm:$0xff] %vm306_vm3, %v3640_v53  ;;  %3752 = vmatmul.mubr.msk.f32.vlgmr.msra.gmra.mxu1 %vm1355_vm4, %v4574_v52  ;;  %3754 = vmatprep.subr.mxu1 %v1440_v54 }
 0x11c   : > { %v920_v55 = vpop.f32.mrf.mxu0  ;;  %3755 = vmatpush3.msra.mxu1 %v1440_v54  ;;  %v1439_v56 = vld [vmem:[#allocation3 + $0x30] sm:$0xff]  ;;  %3762 = vmatprep.mubr.msk.f32.mxu1 %vm1355_vm4, %v4521_v2 }
 0x11d   : > { %1279 = vst.msk [vmem:[#allocation3 + $0x50] sm:$0xff] %vm306_vm3, %v920_v55  ;;  %3756 = vmatprep.subr.mxu1 %v1439_v56 }
 0x11e   : > { %v3643_v57 = vpop.f32.mrf.mxu0  ;;  %3757 = vmatpush3.msra.mxu1 %v1439_v56  ;;  %v1517_v4 = vld [vmem:[#allocation3 + $0x48] sm:$0xff] }
 0x11f   : > { %1282 = vst.msk [vmem:[#allocation3 + $0x68] sm:$0xff] %vm306_vm3, %v3643_v57  ;;  %3758 = vmatprep.subr.mxu1 %v1438_v58 }
 0x120   : > { %v930_v59 = vpop.f32.mrf.mxu0  ;;  %3759 = vmatpush3.msra.mxu1 %v1438_v58  ;;  %v1516_v6 = vld [vmem:[#allocation3 + $0x40] sm:$0xff] }
 0x121   : > { %1281 = vst.msk [vmem:[#allocation3 + $0x60] sm:$0xff] %vm306_vm3, %v930_v59  ;;  %3760 = vmatprep.subr.mxu1 %v1437_v60 }
 0x122   : > { %v3646_v61 = vpop.f32.mrf.mxu0  ;;  %3761 = vmatpush3.msra.mxu1 %v1437_v60  ;;  %v1519_v62 = vld [vmem:[#allocation3 + $0x58] sm:$0xff] }
 0x123   : > { %1284 = vst.msk [vmem:[#allocation3 + $0x78] sm:$0xff] %vm306_vm3, %v3646_v61  ;;  %3763 = vmatmul.mubr.msk.f32.vlgmr.msra.gmra.mxu1 %vm1355_vm4, %v4574_v52  ;;  %3765 = vmatprep.subr.mxu1 %v1519_v62 }
 0x124   : > { %v940_v63 = vpop.f32.mrf.mxu0  ;;  %3766 = vmatpush3.msra.mxu1 %v1519_v62  ;;  %v1518_v0 = vld [vmem:[#allocation3 + $0x50] sm:$0xff]  ;;  %3773 = vmatprep.mubr.msk.f32.mxu1 %vm1355_vm4, %v4521_v2 }
 0x125   : > { %1283 = vst.msk [vmem:[#allocation3 + $0x70] sm:$0xff] %vm306_vm3, %v940_v63  ;;  %3767 = vmatprep.subr.mxu1 %v1518_v0 }
 0x126   : > { %v3649_v1 = vpop.f32.mrf.mxu0  ;;  %3768 = vmatpush3.msra.mxu1 %v1518_v0  ;;  %v1596_v12 = vld [vmem:[#allocation3 + $0x68] sm:$0xff] }
 0x127   : > { %1286 = vst.msk [vmem:[#allocation3 + $0x88] sm:$0xff] %vm306_vm3, %v3649_v1  ;;  %3769 = vmatprep.subr.mxu1 %v1517_v4 }
 0x128   : > { %v950_v5 = vpop.f32.mrf.mxu0  ;;  %3770 = vmatpush3.msra.mxu1 %v1517_v4  ;;  %v1595_v14 = vld [vmem:[#allocation3 + $0x60] sm:$0xff] }
 0x129   : > { %1285 = vst.msk [vmem:[#allocation3 + $0x80] sm:$0xff] %vm306_vm3, %v950_v5  ;;  %3771 = vmatprep.subr.mxu1 %v1516_v6 }
 0x12a   : > { %v3652_v7 = vpop.f32.mrf.mxu0  ;;  %3772 = vmatpush3.msra.mxu1 %v1516_v6  ;;  %v1598_v8 = vld [vmem:[#allocation3 + $0x78] sm:$0xff] }
 0x12b   : > { %1288 = vst.msk [vmem:[#allocation3 + $0x98] sm:$0xff] %vm306_vm3, %v3652_v7  ;;  %3774 = vmatmul.mubr.msk.f32.vlgmr.msra.gmra.mxu1 %vm1355_vm4, %v4574_v52  ;;  %3776 = vmatprep.subr.mxu1 %v1598_v8 }
 0x12c   : > { %v960_v9 = vpop.f32.mrf.mxu0  ;;  %3777 = vmatpush3.msra.mxu1 %v1598_v8  ;;  %v1597_v10 = vld [vmem:[#allocation3 + $0x70] sm:$0xff]  ;;  %3784 = vmatprep.mubr.msk.f32.mxu1 %vm1355_vm4, %v4521_v2 }
 0x12d   : > { %1287 = vst.msk [vmem:[#allocation3 + $0x90] sm:$0xff] %vm306_vm3, %v960_v9  ;;  %3778 = vmatprep.subr.mxu1 %v1597_v10 }
 0x12e   : > { %v3655_v11 = vpop.f32.mrf.mxu0  ;;  %3779 = vmatpush3.msra.mxu1 %v1597_v10  ;;  %v1675_v20 = vld [vmem:[#allocation3 + $0x88] sm:$0xff] }
 0x12f   : > { %1290 = vst.msk [vmem:[#allocation3 + $0xa8] sm:$0xff] %vm306_vm3, %v3655_v11  ;;  %3780 = vmatprep.subr.mxu1 %v1596_v12 }
 0x130   : > { %v970_v13 = vpop.f32.mrf.mxu0  ;;  %3781 = vmatpush3.msra.mxu1 %v1596_v12  ;;  %v1674_v22 = vld [vmem:[#allocation3 + $0x80] sm:$0xff] }
 0x131   : > { %1289 = vst.msk [vmem:[#allocation3 + $0xa0] sm:$0xff] %vm306_vm3, %v970_v13  ;;  %3782 = vmatprep.subr.mxu1 %v1595_v14 }
 0x132   : > { %v3658_v15 = vpop.f32.mrf.mxu0  ;;  %3783 = vmatpush3.msra.mxu1 %v1595_v14  ;;  %v1677_v16 = vld [vmem:[#allocation3 + $0x98] sm:$0xff] }
 0x133   : > { %1292 = vst.msk [vmem:[#allocation3 + $0xb8] sm:$0xff] %vm306_vm3, %v3658_v15  ;;  %3785 = vmatmul.mubr.msk.f32.vlgmr.msra.gmra.mxu1 %vm1355_vm4, %v4574_v52  ;;  %3787 = vmatprep.subr.mxu1 %v1677_v16 }
 0x134   : > { %v980_v17 = vpop.f32.mrf.mxu0  ;;  %3788 = vmatpush3.msra.mxu1 %v1677_v16  ;;  %v1676_v18 = vld [vmem:[#allocation3 + $0x90] sm:$0xff]  ;;  %3795 = vmatprep.mubr.msk.f32.mxu1 %vm1355_vm4, %v4521_v2 }
 0x135   : > { %1291 = vst.msk [vmem:[#allocation3 + $0xb0] sm:$0xff] %vm306_vm3, %v980_v17  ;;  %3789 = vmatprep.subr.mxu1 %v1676_v18 }
 0x136   : > { %v3661_v19 = vpop.f32.mrf.mxu0  ;;  %3790 = vmatpush3.msra.mxu1 %v1676_v18  ;;  %v1804_v28 = vld [vmem:[#allocation3 + $0xa8] sm:$0xff] }
 0x137   : > { %1294 = vst.msk [vmem:[#allocation3 + $0xc8] sm:$0xff] %vm306_vm3, %v3661_v19  ;;  %3791 = vmatprep.subr.mxu1 %v1675_v20 }
 0x138   : > { %v990_v21 = vpop.f32.mrf.mxu0  ;;  %3792 = vmatpush3.msra.mxu1 %v1675_v20  ;;  %v1803_v30 = vld [vmem:[#allocation3 + $0xa0] sm:$0xff] }
 0x139   : > { %1293 = vst.msk [vmem:[#allocation3 + $0xc0] sm:$0xff] %vm306_vm3, %v990_v21  ;;  %3793 = vmatprep.subr.mxu1 %v1674_v22 }
 0x13a   : > { %v3664_v23 = vpop.f32.mrf.mxu0  ;;  %3794 = vmatpush3.msra.mxu1 %v1674_v22  ;;  %v1806_v24 = vld [vmem:[#allocation3 + $0xb8] sm:$0xff] }
 0x13b   : > { %1296 = vst.msk [vmem:[#allocation3 + $0xd8] sm:$0xff] %vm306_vm3, %v3664_v23  ;;  %3796 = vmatmul.mubr.msk.f32.vlgmr.msra.gmra.mxu1 %vm1355_vm4, %v4574_v52  ;;  %3798 = vmatprep.subr.mxu1 %v1806_v24 }
 0x13c   : > { %v1000_v25 = vpop.f32.mrf.mxu0  ;;  %3799 = vmatpush3.msra.mxu1 %v1806_v24  ;;  %v1805_v26 = vld [vmem:[#allocation3 + $0xb0] sm:$0xff]  ;;  %3806 = vmatprep.mubr.msk.f32.mxu1 %vm1355_vm4, %v4521_v2 }
 0x13d   : > { %1295 = vst.msk [vmem:[#allocation3 + $0xd0] sm:$0xff] %vm306_vm3, %v1000_v25  ;;  %3800 = vmatprep.subr.mxu1 %v1805_v26 }
 0x13e   : > { %v3667_v27 = vpop.f32.mrf.mxu0  ;;  %3801 = vmatpush3.msra.mxu1 %v1805_v26  ;;  %v1889_v36 = vld [vmem:[#allocation3 + $0xc8] sm:$0xff] }
 0x13f   : > { %1298 = vst.msk [vmem:[#allocation3 + $0xe8] sm:$0xff] %vm306_vm3, %v3667_v27  ;;  %3802 = vmatprep.subr.mxu1 %v1804_v28 }
 0x140   : > { %v1010_v29 = vpop.f32.mrf.mxu0  ;;  %3803 = vmatpush3.msra.mxu1 %v1804_v28  ;;  %v1888_v38 = vld [vmem:[#allocation3 + $0xc0] sm:$0xff] }
 0x141   : > { %1297 = vst.msk [vmem:[#allocation3 + $0xe0] sm:$0xff] %vm306_vm3, %v1010_v29  ;;  %3804 = vmatprep.subr.mxu1 %v1803_v30 }
 0x142   : > { %v3670_v31 = vpop.f32.mrf.mxu0  ;;  %3805 = vmatpush3.msra.mxu1 %v1803_v30  ;;  %v1891_v32 = vld [vmem:[#allocation3 + $0xd8] sm:$0xff] }
 0x143   : > { %1300 = vst.msk [vmem:[#allocation3 + $0xf8] sm:$0xff] %vm306_vm3, %v3670_v31  ;;  %3807 = vmatmul.mubr.msk.f32.vlgmr.msra.gmra.mxu1 %vm1355_vm4, %v4574_v52  ;;  %3809 = vmatprep.subr.mxu1 %v1891_v32 }
 0x144   : > { %v1020_v33 = vpop.f32.mrf.mxu0  ;;  %3810 = vmatpush3.msra.mxu1 %v1891_v32  ;;  %v1890_v34 = vld [vmem:[#allocation3 + $0xd0] sm:$0xff]  ;;  %3817 = vmatprep.mubr.msk.f32.mxu1 %vm1355_vm4, %v4521_v2 }
 0x145   : > { %1299 = vst.msk [vmem:[#allocation3 + $0xf0] sm:$0xff] %vm306_vm3, %v1020_v33  ;;  %3811 = vmatprep.subr.mxu1 %v1890_v34 }
 0x146   : > { %v3673_v35 = vpop.f32.mrf.mxu0  ;;  %3812 = vmatpush3.msra.mxu1 %v1890_v34  ;;  %v1968_v44 = vld [vmem:[#allocation3 + $0xe8] sm:$0xff] }
 0x147   : > { %1302 = vst.msk [vmem:[#allocation3 + $0x108] sm:$0xff] %vm306_vm3, %v3673_v35  ;;  %3813 = vmatprep.subr.mxu1 %v1889_v36 }
 0x148   : > { %v1030_v37 = vpop.f32.mrf.mxu0  ;;  %3814 = vmatpush3.msra.mxu1 %v1889_v36  ;;  %v1967_v46 = vld [vmem:[#allocation3 + $0xe0] sm:$0xff] }
 0x149   : > { %1301 = vst.msk [vmem:[#allocation3 + $0x100] sm:$0xff] %vm306_vm3, %v1030_v37  ;;  %3815 = vmatprep.subr.mxu1 %v1888_v38 }
 0x14a   : > { %v3676_v39 = vpop.f32.mrf.mxu0  ;;  %3816 = vmatpush3.msra.mxu1 %v1888_v38  ;;  %v1970_v40 = vld [vmem:[#allocation3 + $0xf8] sm:$0xff] }
 0x14b   : > { %1304 = vst.msk [vmem:[#allocation3 + $0x118] sm:$0xff] %vm306_vm3, %v3676_v39  ;;  %3818 = vmatmul.mubr.msk.f32.vlgmr.msra.gmra.mxu1 %vm1355_vm4, %v4574_v52  ;;  %3820 = vmatprep.subr.mxu1 %v1970_v40 }
 0x14c   : > { %v1040_v41 = vpop.f32.mrf.mxu0  ;;  %3821 = vmatpush3.msra.mxu1 %v1970_v40  ;;  %v1969_v42 = vld [vmem:[#allocation3 + $0xf0] sm:$0xff]  ;;  %3828 = vmatprep.mubr.msk.f32.mxu1 %vm1355_vm4, %v4521_v2 }
 0x14d   : > { %1303 = vst.msk [vmem:[#allocation3 + $0x110] sm:$0xff] %vm306_vm3, %v1040_v41  ;;  %3822 = vmatprep.subr.mxu1 %v1969_v42 }
 0x14e   : > { %v3679_v43 = vpop.f32.mrf.mxu0  ;;  %3823 = vmatpush3.msra.mxu1 %v1969_v42  ;;  %v2047_v51 = vld [vmem:[#allocation3 + $0x108] sm:$0xff] }
 0x14f   : > { %1306 = vst.msk [vmem:[#allocation3 + $0x128] sm:$0xff] %vm306_vm3, %v3679_v43  ;;  %3824 = vmatprep.subr.mxu1 %v1968_v44 }
 0x150   : > { %v1050_v45 = vpop.f32.mrf.mxu0  ;;  %3825 = vmatpush3.msra.mxu1 %v1968_v44  ;;  %v2046_v54 = vld [vmem:[#allocation3 + $0x100] sm:$0xff] }
 0x151   : > { %1305 = vst.msk [vmem:[#allocation3 + $0x120] sm:$0xff] %vm306_vm3, %v1050_v45  ;;  %3826 = vmatprep.subr.mxu1 %v1967_v46 }
 0x152   : > { %v3682_v3 = vpop.f32.mrf.mxu0  ;;  %3827 = vmatpush3.msra.mxu1 %v1967_v46  ;;  %v2049_v47 = vld [vmem:[#allocation3 + $0x118] sm:$0xff] }
 0x153   : > { %1308 = vst.msk [vmem:[#allocation3 + $0x138] sm:$0xff] %vm306_vm3, %v3682_v3  ;;  %3829 = vmatmul.mubr.msk.f32.vlgmr.msra.gmra.mxu1 %vm1355_vm4, %v4574_v52  ;;  %3831 = vmatprep.subr.mxu1 %v2049_v47 }
 0x154   : > { %v1060_v48 = vpop.f32.mrf.mxu0  ;;  %3832 = vmatpush3.msra.mxu1 %v2049_v47  ;;  %v2048_v49 = vld [vmem:[#allocation3 + $0x110] sm:$0xff]  ;;  %3839 = vmatprep.mubr.msk.f32.mxu1 %vm1355_vm4, %v4521_v2 }
 0x155   : > { %1307 = vst.msk [vmem:[#allocation3 + $0x130] sm:$0xff] %vm306_vm3, %v1060_v48  ;;  %3833 = vmatprep.subr.mxu1 %v2048_v49 }
 0x156   : > { %v3685_v50 = vpop.f32.mrf.mxu0  ;;  %3834 = vmatpush3.msra.mxu1 %v2048_v49  ;;  %v2126_v60 = vld [vmem:[#allocation3 + $0x128] sm:$0xff] }
 0x157   : > { %1310 = vst.msk [vmem:[#allocation3 + $0x148] sm:$0xff] %vm306_vm3, %v3685_v50  ;;  %3835 = vmatprep.subr.mxu1 %v2047_v51 }
 0x158   : > { %v1070_v53 = vpop.f32.mrf.mxu0  ;;  %3836 = vmatpush3.msra.mxu1 %v2047_v51  ;;  %v2125_v62 = vld [vmem:[#allocation3 + $0x120] sm:$0xff] }
 0x159   : > { %1309 = vst.msk [vmem:[#allocation3 + $0x140] sm:$0xff] %vm306_vm3, %v1070_v53  ;;  %3837 = vmatprep.subr.mxu1 %v2046_v54 }
 0x15a   : > { %v3688_v55 = vpop.f32.mrf.mxu0  ;;  %3838 = vmatpush3.msra.mxu1 %v2046_v54  ;;  %v2128_v56 = vld [vmem:[#allocation3 + $0x138] sm:$0xff] }
 0x15b   : > { %1312 = vst.msk [vmem:[#allocation3 + $0x158] sm:$0xff] %vm306_vm3, %v3688_v55  ;;  %3840 = vmatmul.mubr.msk.f32.vlgmr.msra.gmra.mxu1 %vm1355_vm4, %v4574_v52  ;;  %3842 = vmatprep.subr.mxu1 %v2128_v56 }
 0x15c   : > { %v1080_v57 = vpop.f32.mrf.mxu0  ;;  %3843 = vmatpush3.msra.mxu1 %v2128_v56  ;;  %v2127_v58 = vld [vmem:[#allocation3 + $0x130] sm:$0xff]  ;;  %3850 = vmatprep.mubr.msk.f32.mxu1 %vm1355_vm4, %v4521_v2 }
 0x15d   : > { %1311 = vst.msk [vmem:[#allocation3 + $0x150] sm:$0xff] %vm306_vm3, %v1080_v57  ;;  %3844 = vmatprep.subr.mxu1 %v2127_v58 }
 0x15e   : > { %v3691_v59 = vpop.f32.mrf.mxu0  ;;  %3845 = vmatpush3.msra.mxu1 %v2127_v58  ;;  %v2255_v6 = vld [vmem:[#allocation3 + $0x148] sm:$0xff] }
 0x15f   : > { %1314 = vst.msk [vmem:[#allocation3 + $0x168] sm:$0xff] %vm306_vm3, %v3691_v59  ;;  %3846 = vmatprep.subr.mxu1 %v2126_v60 }
 0x160   : > { %v1090_v61 = vpop.f32.mrf.mxu0  ;;  %3847 = vmatpush3.msra.mxu1 %v2126_v60  ;;  %v2254_v8 = vld [vmem:[#allocation3 + $0x140] sm:$0xff] }
 0x161   : > { %1313 = vst.msk [vmem:[#allocation3 + $0x160] sm:$0xff] %vm306_vm3, %v1090_v61  ;;  %3848 = vmatprep.subr.mxu1 %v2125_v62 }
 0x162   : > { %v3694_v63 = vpop.f32.mrf.mxu0  ;;  %3849 = vmatpush3.msra.mxu1 %v2125_v62  ;;  %v2257_v0 = vld [vmem:[#allocation3 + $0x158] sm:$0xff] }
 0x163   : > { %1316 = vst.msk [vmem:[#allocation3 + $0x178] sm:$0xff] %vm306_vm3, %v3694_v63  ;;  %3851 = vmatmul.mubr.msk.f32.vlgmr.msra.gmra.mxu1 %vm1355_vm4, %v4574_v52  ;;  %3853 = vmatprep.subr.mxu1 %v2257_v0 }
 0x164   : > { %v1100_v1 = vpop.f32.mrf.mxu0  ;;  %3854 = vmatpush3.msra.mxu1 %v2257_v0  ;;  %v2256_v4 = vld [vmem:[#allocation3 + $0x150] sm:$0xff]  ;;  %3861 = vmatprep.mubr.msk.f32.mxu1 %vm1355_vm4, %v4521_v2 }
 0x165   : > { %1315 = vst.msk [vmem:[#allocation3 + $0x170] sm:$0xff] %vm306_vm3, %v1100_v1  ;;  %3855 = vmatprep.subr.mxu1 %v2256_v4 }
 0x166   : > { %v3697_v5 = vpop.f32.mrf.mxu0  ;;  %3856 = vmatpush3.msra.mxu1 %v2256_v4  ;;  %v2340_v14 = vld [vmem:[#allocation3 + $0x168] sm:$0xff] }
 0x167   : > { %1318 = vst.msk [vmem:[#allocation3 + $0x188] sm:$0xff] %vm306_vm3, %v3697_v5  ;;  %3857 = vmatprep.subr.mxu1 %v2255_v6 }
 0x168   : > { %v1110_v7 = vpop.f32.mrf.mxu0  ;;  %3858 = vmatpush3.msra.mxu1 %v2255_v6  ;;  %v2339_v16 = vld [vmem:[#allocation3 + $0x160] sm:$0xff] }
 0x169   : > { %1317 = vst.msk [vmem:[#allocation3 + $0x180] sm:$0xff] %vm306_vm3, %v1110_v7  ;;  %3859 = vmatprep.subr.mxu1 %v2254_v8 }
 0x16a   : > { %v3700_v9 = vpop.f32.mrf.mxu0  ;;  %3860 = vmatpush3.msra.mxu1 %v2254_v8  ;;  %v2342_v10 = vld [vmem:[#allocation3 + $0x178] sm:$0xff] }
 0x16b   : > { %1320 = vst.msk [vmem:[#allocation3 + $0x198] sm:$0xff] %vm306_vm3, %v3700_v9  ;;  %3862 = vmatmul.mubr.msk.f32.vlgmr.msra.gmra.mxu1 %vm1355_vm4, %v4574_v52  ;;  %3864 = vmatprep.subr.mxu1 %v2342_v10 }
 0x16c   : > { %v1120_v11 = vpop.f32.mrf.mxu0  ;;  %3865 = vmatpush3.msra.mxu1 %v2342_v10  ;;  %v2341_v12 = vld [vmem:[#allocation3 + $0x170] sm:$0xff]  ;;  %3872 = vmatprep.mubr.msk.f32.mxu1 %vm1355_vm4, %v4521_v2 }
 0x16d   : > { %1319 = vst.msk [vmem:[#allocation3 + $0x190] sm:$0xff] %vm306_vm3, %v1120_v11  ;;  %3866 = vmatprep.subr.mxu1 %v2341_v12 }
 0x16e   : > { %v3703_v13 = vpop.f32.mrf.mxu0  ;;  %3867 = vmatpush3.msra.mxu1 %v2341_v12  ;;  %v2419_v22 = vld [vmem:[#allocation3 + $0x188] sm:$0xff] }
 0x16f   : > { %1322 = vst.msk [vmem:[#allocation3 + $0x1a8] sm:$0xff] %vm306_vm3, %v3703_v13  ;;  %3868 = vmatprep.subr.mxu1 %v2340_v14 }
 0x170   : > { %v1130_v15 = vpop.f32.mrf.mxu0  ;;  %3869 = vmatpush3.msra.mxu1 %v2340_v14  ;;  %v2418_v24 = vld [vmem:[#allocation3 + $0x180] sm:$0xff] }
 0x171   : > { %1321 = vst.msk [vmem:[#allocation3 + $0x1a0] sm:$0xff] %vm306_vm3, %v1130_v15  ;;  %3870 = vmatprep.subr.mxu1 %v2339_v16 }
 0x172   : > { %v3706_v17 = vpop.f32.mrf.mxu0  ;;  %3871 = vmatpush3.msra.mxu1 %v2339_v16  ;;  %v2421_v18 = vld [vmem:[#allocation3 + $0x198] sm:$0xff] }
 0x173   : > { %1324 = vst.msk [vmem:[#allocation3 + $0x1b8] sm:$0xff] %vm306_vm3, %v3706_v17  ;;  %3873 = vmatmul.mubr.msk.f32.vlgmr.msra.gmra.mxu1 %vm1355_vm4, %v4574_v52  ;;  %3875 = vmatprep.subr.mxu1 %v2421_v18 }
 0x174   : > { %v1140_v19 = vpop.f32.mrf.mxu0  ;;  %3876 = vmatpush3.msra.mxu1 %v2421_v18  ;;  %v2420_v20 = vld [vmem:[#allocation3 + $0x190] sm:$0xff]  ;;  %3883 = vmatprep.mubr.msk.f32.mxu1 %vm1355_vm4, %v4521_v2 }
 0x175   : > { %1323 = vst.msk [vmem:[#allocation3 + $0x1b0] sm:$0xff] %vm306_vm3, %v1140_v19  ;;  %3877 = vmatprep.subr.mxu1 %v2420_v20 }
 0x176   : > { %v3709_v21 = vpop.f32.mrf.mxu0  ;;  %3878 = vmatpush3.msra.mxu1 %v2420_v20  ;;  %v2498_v30 = vld [vmem:[#allocation3 + $0x1a8] sm:$0xff] }
 0x177   : > { %1326 = vst.msk [vmem:[#allocation3 + $0x1c8] sm:$0xff] %vm306_vm3, %v3709_v21  ;;  %3879 = vmatprep.subr.mxu1 %v2419_v22 }
 0x178   : > { %v1150_v23 = vpop.f32.mrf.mxu0  ;;  %3880 = vmatpush3.msra.mxu1 %v2419_v22  ;;  %v2497_v32 = vld [vmem:[#allocation3 + $0x1a0] sm:$0xff] }
 0x179   : > { %1325 = vst.msk [vmem:[#allocation3 + $0x1c0] sm:$0xff] %vm306_vm3, %v1150_v23  ;;  %3881 = vmatprep.subr.mxu1 %v2418_v24 }
 0x17a   : > { %v3712_v25 = vpop.f32.mrf.mxu0  ;;  %3882 = vmatpush3.msra.mxu1 %v2418_v24  ;;  %v2500_v26 = vld [vmem:[#allocation3 + $0x1b8] sm:$0xff] }
 0x17b   : > { %1328 = vst.msk [vmem:[#allocation3 + $0x1d8] sm:$0xff] %vm306_vm3, %v3712_v25  ;;  %3884 = vmatmul.mubr.msk.f32.vlgmr.msra.gmra.mxu1 %vm1355_vm4, %v4574_v52  ;;  %3886 = vmatprep.subr.mxu1 %v2500_v26 }
 0x17c   : > { %v1160_v27 = vpop.f32.mrf.mxu0  ;;  %3887 = vmatpush3.msra.mxu1 %v2500_v26  ;;  %v2499_v28 = vld [vmem:[#allocation3 + $0x1b0] sm:$0xff]  ;;  %3894 = vmatprep.mubr.msk.f32.mxu1 %vm1355_vm4, %v4521_v2 }
 0x17d   : > { %1327 = vst.msk [vmem:[#allocation3 + $0x1d0] sm:$0xff] %vm306_vm3, %v1160_v27  ;;  %3888 = vmatprep.subr.mxu1 %v2499_v28 }
 0x17e   : > { %v3715_v29 = vpop.f32.mrf.mxu0  ;;  %3889 = vmatpush3.msra.mxu1 %v2499_v28  ;;  %v2577_v38 = vld [vmem:[#allocation3 + $0x1c8] sm:$0xff] }
 0x17f   : > { %1330 = vst.msk [vmem:[#allocation3 + $0x1e8] sm:$0xff] %vm306_vm3, %v3715_v29  ;;  %3890 = vmatprep.subr.mxu1 %v2498_v30 }
 0x180   : > { %v1170_v31 = vpop.f32.mrf.mxu0  ;;  %3891 = vmatpush3.msra.mxu1 %v2498_v30  ;;  %v2576_v40 = vld [vmem:[#allocation3 + $0x1c0] sm:$0xff] }
 0x181   : > { %1329 = vst.msk [vmem:[#allocation3 + $0x1e0] sm:$0xff] %vm306_vm3, %v1170_v31  ;;  %3892 = vmatprep.subr.mxu1 %v2497_v32 }
 0x182   : > { %v3718_v33 = vpop.f32.mrf.mxu0  ;;  %3893 = vmatpush3.msra.mxu1 %v2497_v32  ;;  %v2579_v34 = vld [vmem:[#allocation3 + $0x1d8] sm:$0xff] }
 0x183   : > { %1332 = vst.msk [vmem:[#allocation3 + $0x1f8] sm:$0xff] %vm306_vm3, %v3718_v33  ;;  %3895 = vmatmul.mubr.msk.f32.vlgmr.msra.gmra.mxu1 %vm1355_vm4, %v4574_v52  ;;  %3897 = vmatprep.subr.mxu1 %v2579_v34 }
 0x184   : > { %v1180_v35 = vpop.f32.mrf.mxu0  ;;  %3898 = vmatpush3.msra.mxu1 %v2579_v34  ;;  %v2578_v36 = vld [vmem:[#allocation3 + $0x1d0] sm:$0xff]  ;;  %3905 = vmatprep.mubr.msk.f32.mxu1 %vm1355_vm4, %v4521_v2 }
 0x185   : > { %1331 = vst.msk [vmem:[#allocation3 + $0x1f0] sm:$0xff] %vm306_vm3, %v1180_v35  ;;  %3899 = vmatprep.subr.mxu1 %v2578_v36 }
 0x186   : > { %v3721_v37 = vpop.f32.mrf.mxu0  ;;  %3900 = vmatpush3.msra.mxu1 %v2578_v36  ;;  %v2706_v46 = vld [vmem:[#allocation3 + $0x1e8] sm:$0xff] }
 0x187   : > { %1334 = vst.msk [vmem:[#allocation3 + $0x208] sm:$0xff] %vm306_vm3, %v3721_v37  ;;  %3901 = vmatprep.subr.mxu1 %v2577_v38 }
 0x188   : > { %v1190_v39 = vpop.f32.mrf.mxu0  ;;  %3902 = vmatpush3.msra.mxu1 %v2577_v38  ;;  %v2705_v47 = vld [vmem:[#allocation3 + $0x1e0] sm:$0xff] }
 0x189   : > { %1333 = vst.msk [vmem:[#allocation3 + $0x200] sm:$0xff] %vm306_vm3, %v1190_v39  ;;  %3903 = vmatprep.subr.mxu1 %v2576_v40 }
 0x18a   : > { %v3724_v41 = vpop.f32.mrf.mxu0  ;;  %3904 = vmatpush3.msra.mxu1 %v2576_v40  ;;  %v2708_v42 = vld [vmem:[#allocation3 + $0x1f8] sm:$0xff] }
 0x18b   : > { %1336 = vst.msk [vmem:[#allocation3 + $0x218] sm:$0xff] %vm306_vm3, %v3724_v41  ;;  %3906 = vmatmul.mubr.msk.f32.vlgmr.msra.gmra.mxu1 %vm1355_vm4, %v4574_v52  ;;  %3908 = vmatprep.subr.mxu1 %v2708_v42 }
 0x18c   : > { %v1200_v43 = vpop.f32.mrf.mxu0  ;;  %3909 = vmatpush3.msra.mxu1 %v2708_v42  ;;  %v2707_v44 = vld [vmem:[#allocation3 + $0x1f0] sm:$0xff]  ;;  %3916 = vmatprep.mubr.msk.f32.mxu1 %vm1355_vm4, %v4521_v2 }
 0x18d   : > { %1335 = vst.msk [vmem:[#allocation3 + $0x210] sm:$0xff] %vm306_vm3, %v1200_v43  ;;  %3910 = vmatprep.subr.mxu1 %v2707_v44 }
 0x18e   : > { %v3727_v45 = vpop.f32.mrf.mxu0  ;;  %3911 = vmatpush3.msra.mxu1 %v2707_v44  ;;  %v2791_v54 = vld [vmem:[#allocation3 + $0x208] sm:$0xff] }
 0x18f   : > { %1338 = vst.msk [vmem:[#allocation3 + $0x228] sm:$0xff] %vm306_vm3, %v3727_v45  ;;  %3912 = vmatprep.subr.mxu1 %v2706_v46 }
 0x190   : > { %v1210_v3 = vpop.f32.mrf.mxu0  ;;  %3913 = vmatpush3.msra.mxu1 %v2706_v46  ;;  %v2790_v56 = vld [vmem:[#allocation3 + $0x200] sm:$0xff] }
 0x191   : > { %1337 = vst.msk [vmem:[#allocation3 + $0x220] sm:$0xff] %vm306_vm3, %v1210_v3  ;;  %3914 = vmatprep.subr.mxu1 %v2705_v47 }
 0x192   : > { %v3730_v48 = vpop.f32.mrf.mxu0  ;;  %3915 = vmatpush3.msra.mxu1 %v2705_v47  ;;  %v2793_v49 = vld [vmem:[#allocation3 + $0x218] sm:$0xff] }
 0x193   : > { %1340 = vst.msk [vmem:[#allocation3 + $0x238] sm:$0xff] %vm306_vm3, %v3730_v48  ;;  %3917 = vmatmul.mubr.msk.f32.vlgmr.msra.gmra.mxu1 %vm1355_vm4, %v4574_v52  ;;  %3919 = vmatprep.subr.mxu1 %v2793_v49 }
 0x194   : > { %v1220_v50 = vpop.f32.mrf.mxu0  ;;  %3920 = vmatpush3.msra.mxu1 %v2793_v49  ;;  %v2792_v51 = vld [vmem:[#allocation3 + $0x210] sm:$0xff]  ;;  %3927 = vmatprep.mubr.msk.f32.mxu1 %vm1355_vm4, %v4521_v2 }
 0x195   : > { %1339 = vst.msk [vmem:[#allocation3 + $0x230] sm:$0xff] %vm306_vm3, %v1220_v50  ;;  %3921 = vmatprep.subr.mxu1 %v2792_v51 }
 0x196   : > { %v3733_v53 = vpop.f32.mrf.mxu0  ;;  %3922 = vmatpush3.msra.mxu1 %v2792_v51  ;;  %v2870_v62 = vld [vmem:[#allocation3 + $0x228] sm:$0xff] }
 0x197   : > { %1342 = vst.msk [vmem:[#allocation3 + $0x248] sm:$0xff] %vm306_vm3, %v3733_v53  ;;  %3923 = vmatprep.subr.mxu1 %v2791_v54 }
 0x198   : > { %v1230_v55 = vpop.f32.mrf.mxu0  ;;  %3924 = vmatpush3.msra.mxu1 %v2791_v54  ;;  %v2869_v0 = vld [vmem:[#allocation3 + $0x220] sm:$0xff] }
 0x199   : > { %1341 = vst.msk [vmem:[#allocation3 + $0x240] sm:$0xff] %vm306_vm3, %v1230_v55  ;;  %3925 = vmatprep.subr.mxu1 %v2790_v56 }
 0x19a   : > { %v3736_v57 = vpop.f32.mrf.mxu0  ;;  %3926 = vmatpush3.msra.mxu1 %v2790_v56  ;;  %v2872_v58 = vld [vmem:[#allocation3 + $0x238] sm:$0xff] }
 0x19b   : > { %1344 = vst.msk [vmem:[#allocation3 + $0x258] sm:$0xff] %vm306_vm3, %v3736_v57  ;;  %3928 = vmatmul.mubr.msk.f32.vlgmr.msra.gmra.mxu1 %vm1355_vm4, %v4574_v52  ;;  %3930 = vmatprep.subr.mxu1 %v2872_v58 }
 0x19c   : > { %v1240_v59 = vpop.f32.mrf.mxu0  ;;  %3931 = vmatpush3.msra.mxu1 %v2872_v58  ;;  %v2871_v60 = vld [vmem:[#allocation3 + $0x230] sm:$0xff]  ;;  %3938 = vmatprep.mubr.msk.f32.mxu1 %vm1355_vm4, %v4521_v2 }
 0x19d   : > { %1343 = vst.msk [vmem:[#allocation3 + $0x250] sm:$0xff] %vm306_vm3, %v1240_v59  ;;  %3932 = vmatprep.subr.mxu1 %v2871_v60 }
 0x19e   : > { %v3739_v61 = vpop.f32.mrf.mxu0  ;;  %3933 = vmatpush3.msra.mxu1 %v2871_v60  ;;  %v2949_v7 = vld [vmem:[#allocation3 + $0x248] sm:$0xff] }
 0x19f   : > { %1346 = vst.msk [vmem:[#allocation3 + $0x268] sm:$0xff] %vm306_vm3, %v3739_v61  ;;  %3934 = vmatprep.subr.mxu1 %v2870_v62  ;;  %v1796_v61 = vld [vmem:[#allocation4 + $0x8] sm:$0xff] }
 0x1a0   : > { %v1250_v63 = vpop.f32.mrf.mxu0  ;;  %3935 = vmatpush3.msra.mxu1 %v2870_v62  ;;  %v2948_v8 = vld [vmem:[#allocation3 + $0x240] sm:$0xff] }
 0x1a1   : > { %1345 = vst.msk [vmem:[#allocation3 + $0x260] sm:$0xff] %vm306_vm3, %v1250_v63  ;;  %3936 = vmatprep.subr.mxu1 %v2869_v0 }
 0x1a2   : > { %v3742_v1 = vpop.f32.mrf.mxu0  ;;  %3937 = vmatpush3.msra.mxu1 %v2869_v0  ;;  %v2951_v4 = vld [vmem:[#allocation3 + $0x258] sm:$0xff] }
 0x1a3   : > { %1348 = vst.msk [vmem:[#allocation3 + $0x278] sm:$0xff] %vm306_vm3, %v3742_v1  ;;  %3939 = vmatmul.mubr.msk.f32.vlgmr.msra.gmra.mxu1 %vm1355_vm4, %v4574_v52  ;;  %3941 = vmatprep.subr.mxu1 %v2951_v4 }
 0x1a4   : > { %v1260_v5 = vpop.f32.mrf.mxu0  ;;  %3942 = vmatpush3.msra.mxu1 %v2951_v4  ;;  %v2950_v6 = vld [vmem:[#allocation3 + $0x250] sm:$0xff]  ;;  %3949 = vmatprep.mubr.msk.f32.mxu1 %vm1355_vm4, %v4521_v2  ;;  %v1795_v4 = vld [vmem:[#allocation4] sm:$0xff] }
 0x1a5   : > { %1347 = vst.msk [vmem:[#allocation3 + $0x270] sm:$0xff] %vm306_vm3, %v1260_v5  ;;  %3943 = vmatprep.subr.mxu1 %v2950_v6 }
 0x1a6   : > { %3944 = vmatpush3.msra.mxu1 %v2950_v6  ;;  %v3028_v11 = vld [vmem:[#allocation3 + $0x268] sm:$0xff] }
 0x1a7   : > { %3945 = vmatprep.subr.mxu1 %v2949_v7 }
 0x1a8   : > { %3946 = vmatpush3.msra.mxu1 %v2949_v7  ;;  %v3027_v12 = vld [vmem:[#allocation3 + $0x260] sm:$0xff] }
 0x1a9   : > { %3947 = vmatprep.subr.mxu1 %v2948_v8 }
 0x1aa   : > { %3948 = vmatpush3.msra.mxu1 %v2948_v8  ;;  %v3030_v9 = vld [vmem:[#allocation3 + $0x278] sm:$0xff] }
 0x1ab   : > { %3950 = vmatmul.mubr.msk.f32.vlgmr.msra.gmra.mxu1 %vm1355_vm4, %v4574_v52  ;;  %3952 = vmatprep.subr.mxu1 %v3030_v9 }
 0x1ac   : > { %3953 = vmatpush3.msra.mxu1 %v3030_v9  ;;  %v3029_v10 = vld [vmem:[#allocation3 + $0x270] sm:$0xff]  ;;  %3960 = vmatprep.mubr.msk.f32.mxu1 %vm1355_vm4, %v4521_v2 }
 0x1ad   : > { %3954 = vmatprep.subr.mxu1 %v3029_v10 }
 0x1ae   : > { %3955 = vmatpush3.msra.mxu1 %v3029_v10 }
 0x1af   : > { %3956 = vmatprep.subr.mxu1 %v3028_v11 }
 0x1b0   : > { %3957 = vmatpush3.msra.mxu1 %v3028_v11 }
 0x1b1   : > { %3958 = vmatprep.subr.mxu1 %v3027_v12 }
 0x1b2   : > { %3959 = vmatpush3.msra.mxu1 %v3027_v12 }
 0x1b3   : > { %3961 = vmatmul.mubr.msk.f32.vlgmr.msra.gmra.mxu1 %vm1355_vm4, %v4574_v52 }
 0x1db   : > { %v3753_v13 = vpop.f32.mrf.mxu1 }
 0x1dc   : > { %v1754_v20 = vmul.f32 %v3753_v13, %v3753_v13 }
 0x1dd   : > { %v1428_v14 = vpop.f32.mrf.mxu1 }
 0x1de   : > { %v1753_v22 = vmul.f32 %v1428_v14, %v1428_v14 }
 0x1e3   : > { %v3764_v15 = vpop.f32.mrf.mxu1 }
 0x1e4   : > { %v1756_v18 = vmul.f32 %v3764_v15, %v3764_v15  ;;  %v1758_v38 = vmul.f32 %v3764_v15, %v3753_v13 }
 0x1e5   : > { %v1507_v16 = vpop.f32.mrf.mxu1 }
 0x1e6   : > { %v1755_v21 = vmul.f32 %v1507_v16, %v1507_v16  ;;  %v1776_v23 = vadd.f32 %v1756_v18, %v1754_v20  ;;  %v1757_v40 = vmul.f32 %v1507_v16, %v1428_v14  ;;  %v1766_v44 = vmul.f32 2.0, %v1758_v38 }
 0x1e8   : > { %v1775_v27 = vadd.f32 %v1755_v21, %v1753_v22  ;;  %v1778_v52 = vadd.f32 0.0001, %v1776_v23  ;;  %v1765_v47 = vmul.f32 2.0, %v1757_v40  ;;  %v1768_v51 = vadd.f32 0.0001, %v1766_v44 }
 0x1ea   : > { %v1777_v33 = vadd.f32 0.0001, %v1775_v27  ;;  %v1767_v57 = vadd.f32 0.0001, %v1765_v47 }
 0x1eb   : > { %v3775_v17 = vpop.f32.mrf.mxu1 }
 0x1ec   : > { %v1760_v24 = vsub.f32 %v3775_v17, %v1754_v20 }
 0x1ed   : > { %v1586_v19 = vpop.f32.mrf.mxu1 }
 0x1ee   : > { %v1759_v28 = vsub.f32 %v1586_v19, %v1753_v22 }
 0x1f3   : > { %v3786_v2 = vpop.f32.mrf.mxu1 }
 0x1f4   : > { %v1762_v25 = vsub.f32 %v3786_v2, %v1756_v18 }
 0x1f5   : > { %v1665_v26 = vpop.f32.mrf.mxu1 }
 0x1f6   : > { %v1780_v29 = vadd.f32 %v1762_v25, %v1760_v24  ;;  %v1761_v30 = vsub.f32 %v1665_v26, %v1755_v21 }
 0x1f8   : > { %v1782_v31 = vadd.f32 0.0009, %v1780_v29  ;;  %v1779_v32 = vadd.f32 %v1761_v30, %v1759_v28 }
 0x1fa   : > { %v1784_v34 = vmul.f32 %v1782_v31, %v1778_v52  ;;  %v1781_v35 = vadd.f32 0.0009, %v1779_v32 }
 0x1fb   : > { %v3797_v37 = vpop.f32.mrf.mxu1 }
 0x1fc   : > { %4005 = vrcp.f32 %v1784_v34  ;;  %v1783_v36 = vmul.f32 %v1781_v35, %v1777_v33  ;;  %v1764_v41 = vsub.f32 %v3797_v37, %v1758_v38 }
 0x1fd   : > { %v1744_v39 = vpop.f32.mrf.mxu1 }
 0x1fe   : > { %4007 = vrcp.f32 %v1783_v36  ;;  %v1763_v42 = vsub.f32 %v1744_v39, %v1757_v40  ;;  %v1770_v43 = vmul.f32 2.0, %v1764_v41 }
 0x200   : > { %v1769_v45 = vmul.f32 2.0, %v1763_v42  ;;  %v1772_v49 = vadd.f32 0.0009, %v1770_v43 }
 0x202   : > { %v1771_v55 = vadd.f32 0.0009, %v1769_v45  ;;  %v1774_v59 = vmul.f32 %v1772_v49, %v1768_v51 }
 0x203   : > { %v3808_v3 = vpop.f32.mrf.mxu1 }
 0x204   : > { %v1773_v0 = vmul.f32 %v1771_v55, %v1767_v57  ;;  %v2205_v12 = vmul.f32 %v3808_v3, %v3808_v3 }
 0x205   : > { %v1879_v56 = vpop.f32.mrf.mxu1 }
 0x206   : > { %v2204_v15 = vmul.f32 %v1879_v56, %v1879_v56 }
 0x209   : > { %v4006_v46 = vpop.eup %4005 }
 0x20a   : > { %v1788_v48 = vmul.f32 %v4006_v46, %v1784_v34 }
 0x20b   : > { %v4008_v50 = vpop.eup %4007  ;;  %v3819_v62 = vpop.f32.mrf.mxu1 }
 0x20c   : > { %v1790_v53 = vsub.f32 2.0, %v1788_v48  ;;  %v1787_v54 = vmul.f32 %v4008_v50, %v1783_v36  ;;  %v2207_v10 = vmul.f32 %v3819_v62, %v3819_v62  ;;  %v2209_v52 = vmul.f32 %v3819_v62, %v3808_v3 }
 0x20d   : > { %v1958_v7 = vpop.f32.mrf.mxu1 }
 0x20e   : > { %v1789_v58 = vsub.f32 2.0, %v1787_v54  ;;  %v1792_v60 = vmul.f32 %v4006_v46, %v1790_v53  ;;  %v2206_v13 = vmul.f32 %v1958_v7, %v1958_v7  ;;  %v2227_v16 = vadd.f32 %v2207_v10, %v2205_v12 }
 0x20f   : > { %v2208_v32 = vmul.f32 %v1958_v7, %v1879_v56  ;;  %v2217_v36 = vmul.f32 2.0, %v2209_v52 }
 0x210   : > { %v1794_v63 = vmul.f32 %v1792_v60, %v1774_v59  ;;  %v1791_v1 = vmul.f32 %v4008_v50, %v1789_v58  ;;  %v2226_v20 = vadd.f32 %v2206_v13, %v2204_v15  ;;  %v2229_v23 = vadd.f32 0.0001, %v2227_v16 }
 0x211   : > { %v2216_v40 = vmul.f32 2.0, %v2208_v32  ;;  %v2219_v44 = vadd.f32 0.0001, %v2217_v36 }
 0x212   : > { %v1798_v5 = vadd.f32 %v1796_v61, %v1794_v63  ;;  %v1793_v6 = vmul.f32 %v1791_v1, %v1773_v0  ;;  %v2228_v26 = vadd.f32 0.0001, %v2226_v20 }
 0x213   : > { %v3830_v9 = vpop.f32.mrf.mxu1  ;;  %v2218_v49 = vadd.f32 0.0001, %v2216_v40 }
 0x214   : > { %1800 = vst.msk [vmem:[#allocation4 + $0x8] sm:$0xff] %vm306_vm3, %v1798_v5  ;;  %v1797_v8 = vadd.f32 %v1795_v4, %v1793_v6  ;;  %v2211_v17 = vsub.f32 %v3830_v9, %v2205_v12 }
 0x215   : > { %v2037_v11 = vpop.f32.mrf.mxu1 }
 0x216   : > { %1799 = vst.msk [vmem:[#allocation4] sm:$0xff] %vm306_vm3, %v1797_v8  ;;  %v2210_v21 = vsub.f32 %v2037_v11, %v2204_v15 }
 0x21b   : > { %v3841_v14 = vpop.f32.mrf.mxu1  ;;  %v2247_v57 = vld [vmem:[#allocation4 + $0x8] sm:$0xff] }
 0x21c   : > { %v2213_v18 = vsub.f32 %v3841_v14, %v2207_v10 }
 0x21d   : > { %v2116_v19 = vpop.f32.mrf.mxu1  ;;  %v2246_v60 = vld [vmem:[#allocation4] sm:$0xff] }
 0x21e   : > { %v2231_v2 = vadd.f32 %v2213_v18, %v2211_v17  ;;  %v2212_v22 = vsub.f32 %v2116_v19, %v2206_v13 }
 0x220   : > { %v2233_v24 = vadd.f32 0.0009, %v2231_v2  ;;  %v2230_v25 = vadd.f32 %v2212_v22, %v2210_v21 }
 0x222   : > { %v2235_v27 = vmul.f32 %v2233_v24, %v2229_v23  ;;  %v2232_v28 = vadd.f32 0.0009, %v2230_v25 }
 0x223   : > { %v3852_v30 = vpop.f32.mrf.mxu1 }
 0x224   : > { %4009 = vrcp.f32 %v2235_v27  ;;  %v2234_v29 = vmul.f32 %v2232_v28, %v2228_v26  ;;  %v2215_v33 = vsub.f32 %v3852_v30, %v2209_v52 }
 0x225   : > { %v2195_v31 = vpop.f32.mrf.mxu1 }
 0x226   : > { %4011 = vrcp.f32 %v2234_v29  ;;  %v2214_v34 = vsub.f32 %v2195_v31, %v2208_v32  ;;  %v2221_v35 = vmul.f32 2.0, %v2215_v33 }
 0x228   : > { %v2220_v37 = vmul.f32 2.0, %v2214_v34  ;;  %v2223_v42 = vadd.f32 0.0009, %v2221_v35 }
 0x22a   : > { %v2222_v47 = vadd.f32 0.0009, %v2220_v37  ;;  %v2225_v50 = vmul.f32 %v2223_v42, %v2219_v44 }
 0x22b   : > { %v3863_v39 = vpop.f32.mrf.mxu1 }
 0x22c   : > { %v2224_v55 = vmul.f32 %v2222_v47, %v2218_v49  ;;  %v2656_v4 = vmul.f32 %v3863_v39, %v3863_v39 }
 0x22d   : > { %v2330_v48 = vpop.f32.mrf.mxu1 }
 0x22e   : > { %v2655_v7 = vmul.f32 %v2330_v48, %v2330_v48 }
 0x231   : > { %v4010_v38 = vpop.eup %4009 }
 0x232   : > { %v2239_v41 = vmul.f32 %v4010_v38, %v2235_v27 }
 0x233   : > { %v4012_v43 = vpop.eup %4011  ;;  %v3874_v53 = vpop.f32.mrf.mxu1 }
 0x234   : > { %v2241_v45 = vsub.f32 2.0, %v2239_v41  ;;  %v2238_v46 = vmul.f32 %v4012_v43, %v2234_v29  ;;  %v2658_v0 = vmul.f32 %v3874_v53, %v3874_v53  ;;  %v2660_v23 = vmul.f32 %v3874_v53, %v3863_v39 }
 0x235   : > { %v2409_v61 = vpop.f32.mrf.mxu1 }
 0x236   : > { %v2240_v3 = vsub.f32 2.0, %v2238_v46  ;;  %v2243_v51 = vmul.f32 %v4010_v38, %v2241_v45  ;;  %v2657_v5 = vmul.f32 %v2409_v61, %v2409_v61  ;;  %v2678_v8 = vadd.f32 %v2658_v0, %v2656_v4 }
 0x237   : > { %v2659_v25 = vmul.f32 %v2409_v61, %v2330_v48  ;;  %v2668_v29 = vmul.f32 2.0, %v2660_v23 }
 0x238   : > { %v2245_v54 = vmul.f32 %v2243_v51, %v2225_v50  ;;  %v2242_v56 = vmul.f32 %v4012_v43, %v2240_v3  ;;  %v2677_v12 = vadd.f32 %v2657_v5, %v2655_v7  ;;  %v2680_v16 = vadd.f32 0.0001, %v2678_v8 }
 0x239   : > { %v2667_v32 = vmul.f32 2.0, %v2659_v25  ;;  %v2670_v36 = vadd.f32 0.0001, %v2668_v29 }
 0x23a   : > { %v2249_v58 = vadd.f32 %v2247_v57, %v2245_v54  ;;  %v2244_v59 = vmul.f32 %v2242_v56, %v2224_v55  ;;  %v2679_v19 = vadd.f32 0.0001, %v2677_v12 }
 0x23b   : > { %v3885_v63 = vpop.f32.mrf.mxu1  ;;  %v2669_v42 = vadd.f32 0.0001, %v2667_v32 }
 0x23c   : > { %2251 = vst.msk [vmem:[#allocation4 + $0x8] sm:$0xff] %vm306_vm3, %v2249_v58  ;;  %v2248_v62 = vadd.f32 %v2246_v60, %v2244_v59  ;;  %v2662_v9 = vsub.f32 %v3885_v63, %v2656_v4 }
 0x23d   : > { %v2488_v1 = vpop.f32.mrf.mxu1 }
 0x23e   : > { %2250 = vst.msk [vmem:[#allocation4] sm:$0xff] %vm306_vm3, %v2248_v62  ;;  %v2661_v13 = vsub.f32 %v2488_v1, %v2655_v7 }
 0x243   : > { %v3896_v6 = vpop.f32.mrf.mxu1  ;;  %v2698_v49 = vld [vmem:[#allocation4 + $0x8] sm:$0xff] }
 0x244   : > { %v2664_v10 = vsub.f32 %v3896_v6, %v2658_v0 }
 0x245   : > { %v2567_v11 = vpop.f32.mrf.mxu1  ;;  %v2697_v51 = vld [vmem:[#allocation4] sm:$0xff] }
 0x246   : > { %v2682_v14 = vadd.f32 %v2664_v10, %v2662_v9  ;;  %v2663_v15 = vsub.f32 %v2567_v11, %v2657_v5 }
 0x248   : > { %v2684_v17 = vadd.f32 0.0009, %v2682_v14  ;;  %v2681_v18 = vadd.f32 %v2663_v15, %v2661_v13 }
 0x24a   : > { %v2686_v20 = vmul.f32 %v2684_v17, %v2680_v16  ;;  %v2683_v21 = vadd.f32 0.0009, %v2681_v18 }
 0x24b   : > { %v3907_v22 = vpop.f32.mrf.mxu1 }
 0x24c   : > { %4013 = vrcp.f32 %v2686_v20  ;;  %v2685_v2 = vmul.f32 %v2683_v21, %v2679_v19  ;;  %v2666_v26 = vsub.f32 %v3907_v22, %v2660_v23 }
 0x24d   : > { %v2646_v24 = vpop.f32.mrf.mxu1 }
 0x24e   : > { %4015 = vrcp.f32 %v2685_v2  ;;  %v2665_v27 = vsub.f32 %v2646_v24, %v2659_v25  ;;  %v2672_v28 = vmul.f32 2.0, %v2666_v26 }
 0x250   : > { %v2671_v30 = vmul.f32 2.0, %v2665_v27  ;;  %v2674_v34 = vadd.f32 0.0009, %v2672_v28 }
 0x252   : > { %v2673_v40 = vadd.f32 0.0009, %v2671_v30  ;;  %v2676_v43 = vmul.f32 %v2674_v34, %v2670_v36 }
 0x253   : > { %v3918_v31 = vpop.f32.mrf.mxu1 }
 0x254   : > { %v2675_v47 = vmul.f32 %v2673_v40, %v2669_v42  ;;  %v3107_v58 = vmul.f32 %v3918_v31, %v3918_v31 }
 0x255   : > { %v2781_v41 = vpop.f32.mrf.mxu1 }
 0x256   : > { %v3106_v61 = vmul.f32 %v2781_v41, %v2781_v41 }
 0x259   : > { %v4014_v52 = vpop.eup %4013 }
 0x25a   : > { %v2690_v33 = vmul.f32 %v4014_v52, %v2686_v20 }
 0x25b   : > { %v4016_v35 = vpop.eup %4015  ;;  %v3929_v45 = vpop.f32.mrf.mxu1 }
 0x25c   : > { %v2692_v37 = vsub.f32 2.0, %v2690_v33  ;;  %v2689_v38 = vmul.f32 %v4016_v35, %v2685_v2  ;;  %v3109_v56 = vmul.f32 %v3929_v45, %v3929_v45  ;;  %v3111_v16 = vmul.f32 %v3929_v45, %v3918_v31 }
 0x25d   : > { %v2860_v53 = vpop.f32.mrf.mxu1 }
 0x25e   : > { %v2691_v39 = vsub.f32 2.0, %v2689_v38  ;;  %v2694_v44 = vmul.f32 %v4014_v52, %v2692_v37  ;;  %v3108_v59 = vmul.f32 %v2860_v53, %v2860_v53  ;;  %v3129_v62 = vadd.f32 %v3109_v56, %v3107_v58 }
 0x25f   : > { %v3110_v18 = vmul.f32 %v2860_v53, %v2781_v41  ;;  %v3119_v2 = vmul.f32 2.0, %v3111_v16 }
 0x260   : > { %v2696_v46 = vmul.f32 %v2694_v44, %v2676_v43  ;;  %v2693_v48 = vmul.f32 %v4016_v35, %v2691_v39  ;;  %v3128_v4 = vadd.f32 %v3108_v59, %v3106_v61  ;;  %v3131_v8 = vadd.f32 0.0001, %v3129_v62 }
 0x261   : > { %v3118_v24 = vmul.f32 2.0, %v3110_v18  ;;  %v3121_v28 = vadd.f32 0.0001, %v3119_v2 }
 0x262   : > { %v2700_v3 = vadd.f32 %v2698_v49, %v2696_v46  ;;  %v2695_v50 = vmul.f32 %v2693_v48, %v2675_v47  ;;  %v3130_v11 = vadd.f32 0.0001, %v3128_v4 }
 0x263   : > { %v3940_v55 = vpop.f32.mrf.mxu1  ;;  %v3120_v32 = vadd.f32 0.0001, %v3118_v24 }
 0x264   : > { %2702 = vst.msk [vmem:[#allocation4 + $0x8] sm:$0xff] %vm306_vm3, %v2700_v3  ;;  %v2699_v54 = vadd.f32 %v2697_v51, %v2695_v50  ;;  %v3113_v63 = vsub.f32 %v3940_v55, %v3107_v58 }
 0x265   : > { %v2939_v57 = vpop.f32.mrf.mxu1 }
 0x266   : > { %2701 = vst.msk [vmem:[#allocation4] sm:$0xff] %vm306_vm3, %v2699_v54  ;;  %v3112_v5 = vsub.f32 %v2939_v57, %v3106_v61 }
 0x26b   : > { %v3951_v60 = vpop.f32.mrf.mxu1  ;;  %v3149_v38 = vld [vmem:[#allocation4 + $0x8] sm:$0xff] }
 0x26c   : > { %v3115_v0 = vsub.f32 %v3951_v60, %v3109_v56 }
 0x26d   : > { %v3018_v1 = vpop.f32.mrf.mxu1  ;;  %v3148_v42 = vld [vmem:[#allocation4] sm:$0xff] }
 0x26e   : > { %v3133_v6 = vadd.f32 %v3115_v0, %v3113_v63  ;;  %v3114_v7 = vsub.f32 %v3018_v1, %v3108_v59 }
 0x270   : > { %v3135_v9 = vadd.f32 0.0009, %v3133_v6  ;;  %v3132_v10 = vadd.f32 %v3114_v7, %v3112_v5 }
 0x272   : > { %v3137_v12 = vmul.f32 %v3135_v9, %v3131_v8  ;;  %v3134_v13 = vadd.f32 0.0009, %v3132_v10 }
 0x273   : > { %v3962_v15 = vpop.f32.mrf.mxu1 }
 0x274   : > { %4017 = vrcp.f32 %v3137_v12  ;;  %v3136_v14 = vmul.f32 %v3134_v13, %v3130_v11  ;;  %v3117_v19 = vsub.f32 %v3962_v15, %v3111_v16 }
 0x275   : > { %v3097_v17 = vpop.f32.mrf.mxu1 }
 0x276   : > { %4019 = vrcp.f32 %v3136_v14  ;;  %v3116_v20 = vsub.f32 %v3097_v17, %v3110_v18  ;;  %v3123_v21 = vmul.f32 2.0, %v3117_v19 }
 0x278   : > { %v3122_v22 = vmul.f32 2.0, %v3116_v20  ;;  %v3125_v26 = vadd.f32 0.0009, %v3123_v21 }
 0x27a   : > { %v3124_v52 = vadd.f32 0.0009, %v3122_v22  ;;  %v3127_v34 = vmul.f32 %v3125_v26, %v3121_v28 }
 0x27c   : > { %v3126_v36 = vmul.f32 %v3124_v52, %v3120_v32 }
 0x281   : > { %v4018_v23 = vpop.eup %4017 }
 0x282   : > { %v3141_v25 = vmul.f32 %v4018_v23, %v3137_v12 }
 0x283   : > { %v4020_v27 = vpop.eup %4019 }
 0x284   : > { %v3143_v29 = vsub.f32 2.0, %v3141_v25  ;;  %v3140_v30 = vmul.f32 %v4020_v27, %v3136_v14 }
 0x286   : > { %v3142_v33 = vsub.f32 2.0, %v3140_v30  ;;  %v3145_v31 = vmul.f32 %v4018_v23, %v3143_v29 }
 0x288   : > { %v3147_v35 = vmul.f32 %v3145_v31, %v3127_v34  ;;  %v3144_v37 = vmul.f32 %v4020_v27, %v3142_v33 }
 0x28a   : > { %v3151_v40 = vadd.f32 %v3149_v38, %v3147_v35  ;;  %v3146_v41 = vmul.f32 %v3144_v37, %v3126_v36 }
 0x28c   : > { %3153 = vst.msk [vmem:[#allocation4 + $0x8] sm:$0xff] %vm306_vm3, %v3151_v40  ;;  %v3150_v39 = vadd.f32 %v3148_v42, %v3146_v41 }
 0x28e   : > { %3152 = vst.msk [vmem:[#allocation4] sm:$0xff] %vm306_vm3, %v3150_v39 }
 0x293   : > { %v3155_v43 = vld [vmem:[#allocation4 + $0x8] sm:$0xff] }
 0x294   : > { %v3157_v46 = vsel %vm306_vm3, %v3155_v43, 0.0 }
 0x295   : > { %v3154_v44 = vld [vmem:[#allocation4] sm:$0xff] }
 0x296   : > { %v3156_v45 = vsel %vm306_vm3, %v3154_v44, 0.0 }
 0x297   : > { %v3158_v47 = vadd.f32 %v3157_v46, %v3156_v45 }
 0x299   : > { %3159 = vadd.xlane.f32.xlu0 %v3158_v47 }
 0x322   : > { %v3160_v48 = vpop.xlane.xlu0 %3159 }
 0x323   : > { %v3161_v49 = vrot.slane %v3160_v48, 4 }
 0x325   : > { %v3162_v3 = vadd.f32 %v3161_v49, %v3160_v48 }
 0x327   : > { %v3163_v50 = vrot.slane %v3162_v3, 2 }
 0x329   : > { %v3164_v51 = vadd.f32 %v3163_v50, %v3162_v3 }
 0x32b   : > { %v3165_v53 = vrot.slane %v3164_v51, 1 }
 0x32d   : > { %v3166_v54 = vadd.f32 %v3165_v53, %v3164_v51 }
 0x32f   : > { %3963 = vpush %v3166_v54 }
 0x360   : > { %s3964_s9 = spop %3963 }
 0x361   : > { %v3168_v55 = vstv %s3964_s9 }
 0x362   : > { %3170 = vst [vmem:[%s210_s6] sm:$0x1] %v3168_v55 }
 0x363   : > { %4034 = shalt.err (!%p4031_p3)
}
 0x364   : > { %s4035_s23 = scalar_lea.hbm %s3182_s12, 16  ;;  %s4039_s29 = scalar_lea.hbm %s4779_s4, 32 }
 0x365   : > { %p4036_p4 = scmp.ne.s32.totalorder %s3182_s12, %s4035_s23  ;;  %p4040_p9 = scmp.lt.s32.totalorder %s3182_s12, %s4779_s4 }
 0x366   : > { %p4041_p10 = scmp.lt.s32.totalorder %s4039_s29, %s4035_s23 }
 0x367   : > { %p4037_p7 = pnand %p4036_p4, %p4148_p5 }
 0x368   : > { %p4042_p11 = por %p4041_p10, %p4040_p9 }
 0x369   : > { %p4038_p8 = pneg %p4037_p7 }
 0x36b   : > { %p4043_p12 = pnand %p4042_p11, %p4038_p8 }
 0x36d   : > { %4046 = shalt.err (!%p4043_p12)
}
 0x36e   : > { %3965 = dma.vmem_to_hbm [thread:$0]  (%p4148_p5), %s4737_s7, 16, %s3182_s12, %s3172_s13  }
 0x36f PF: > { %p3971_p13 = scmp.ge.s32.totalorder %s4081_s18, 2  ;;  %s3196_s6 = sand.u32 1, %s4069_s15  }
 0x370   : > { %s3197_s8 = scalar_lea.sflag [#allocation6], %s3196_s6 }
 0x371   : > { %p3968_p0 = pnand %p3971_p13, %p4152_p6 }
 0x373   : > { %p3969_p1 = pneg %p3968_p0 }
 0x375   : > { %4064 = dma.done.wait (%p3969_p1), %s3197_s8, 16  }
 0x376   : > { %4066 = vsyncadd (%p3969_p1), %s3197_s8, 4294967280  ;;  %p14_p2 = scmp.ge.s32.totalorder %s4135_s21, 4   ;;  %s4783_s15 = smov %s4073_s16 }
 0x377   : > { %s4784_s16 = smov %s4077_s17  ;;  %s4785_s17 = smov %s4146_s24 }
 0x378   : > { %s4786_s18 = smov %s4135_s21  ;;  %16 = sbr.rel (!%p14_p2) target bundleno = 3 (0x3), region = 80 }
 0x37d   :  { %3201 = vsyncpa [#allocation6], 1 }
 0x37e   :  { %3203 = vsyncpa [#allocation6 + $0x1], 1 }

</bundles_post_ra>
